<compile_context>
chip_gen: v5e
topology: v5e:2x2
jax: 0.10.0
libtpu: 0.0.40
codegen_flags: <defaults>
</compile_context>

<pallas_src>
import jax
import jax.numpy as jnp
from jax import lax
from jax.experimental import pallas as pl
from jax.experimental.pallas import tpu as pltpu

# ---------------- hyperparameters ----------------
ALPHABET_SIZE = 40
CHANNELS = 32
KERNEL_SIZE = 3          # odd -> exact "same" padding = d*(k-1)//2
DILATIONS = (1, 2, 4)
LN_EPS = 1e-5
VPAD = 128               # embedding rows padded to one full 128-lane tile


def make_text_encoder_kernel(NT, C, dilations):
    n_res = 2 * len(dilations)   # number of (ReLU, LN, Conv) sub-blocks

    def kernel(ids_ref, emb_ref, pw_w_ref, pw_b_ref, res_w_ref, res_b_ref,
               ln_g_ref, ln_b_ref, shift_ref, out_ref):
        pw_b = pw_b_ref[...]               # (3, C)
        res_b = res_b_ref[...]             # (n_res, C)
        ln_g = ln_g_ref[...]               # (n_res + 1, C)
        ln_b = ln_b_ref[...]

        # ---- embedding lookup as a one-hot MXU matmul ----
        ids = ids_ref[...]                                       # (NT, 1) int32
        tok = lax.broadcasted_iota(jnp.int32, (NT, VPAD), 1)
        onehot = (tok == ids).astype(jnp.float32)                # (NT, VPAD)
        x_emb = jnp.dot(onehot, emb_ref[...],
                        preferred_element_type=jnp.float32)      # (NT, C)

        def pointwise(x, i):
            # Conv1d(C, C, kernel_size=1) == x @ W + b
            return (jnp.dot(x, pw_w_ref[i], preferred_element_type=jnp.float32)
                    + pw_b[i:i + 1, :])

        def layernorm(x, i):
            mu = jnp.mean(x, axis=-1, keepdims=True)
            var = jnp.mean((x - mu) * (x - mu), axis=-1, keepdims=True)
            xn = (x - mu) * lax.rsqrt(var + LN_EPS)
            return xn * ln_g[i:i + 1, :] + ln_b[i:i + 1, :]

        def dilated_conv(x, i, bi):
            # "same" dilated conv, taps at offsets {-d, 0, +d}:
            #   out[t] = b + x[t-d] @ W0 + x[t] @ W1 + x[t+d] @ W2
            # Shift matrices (precomputed, batch-boundary-aware 0/1) produce the
            # shifted copies on the MXU; the K taps are then one packed matmul.
            xm = jnp.dot(shift_ref[bi, 0], x,
                         preferred_element_type=jnp.float32)      # x[t-d]
            xp = jnp.dot(shift_ref[bi, 1], x,
                         preferred_element_type=jnp.float32)      # x[t+d]
            x3 = jnp.concatenate([xm, x, xp], axis=1)             # (NT, 3C)
            return (jnp.dot(x3, res_w_ref[i],
                            preferred_element_type=jnp.float32)
                    + res_b[i:i + 1, :])

        # prenet: Embedding -> Conv1d(k=1) -> ReLU
        embedding = jnp.maximum(pointwise(x_emb, 0), 0.0)

        # res_blocks: for each dilation d:  x = x + [ReLU->LN->Conv]^2 (x)
        x = embedding
        for bi, _ in enumerate(dilations):
            r = x
            for s in range(2):
                idx = 2 * bi + s
                r = jnp.maximum(r, 0.0)
                r = layernorm(r, idx)
                r = dilated_conv(r, idx, bi)
            x = x + r

        # post_net1 + skip connection from prenet output
        x = pointwise(x, 1) + embedding
        # post_net2: ReLU -> LayerNorm -> Conv1d(k=1)
        x = jnp.maximum(x, 0.0)
        x = layernorm(x, n_res)
        x = pointwise(x, 2)

        out_ref[...] = x                                          # one (NT, C) slab

    return kernel


def build_shift_mats(B, T, dilations):
    """S[bi, 0/1] : (NT, NT) 0/1 matrices with (S @ x)[t] = x[t -/+ d] within the
    same batch element, zero at batch boundaries ("same" padding)."""
    NT = B * T
    t = jnp.arange(NT)
    rows, cols = t[:, None], t[None, :]
    mats = []
    for d in dilations:
        per_d = []
        for o in (-d, d):
            src = rows + o
            m = ((cols == src) & (src >= 0) & (src < NT)
                 & ((src // T) == (rows // T)))
            per_d.append(m.astype(jnp.float32))
        mats.append(jnp.stack(per_d, axis=0))
    return jnp.stack(mats, axis=0)            # (n_dil, 2, NT, NT)


def text_encoder_forward(ids, params):
    """ids: (B, T) int32 phoneme indices -> (B, T, C) float32 encoding."""
    B, T = ids.shape
    C, K = CHANNELS, KERNEL_SIZE
    NT = B * T
    n_res = 2 * len(DILATIONS)

    ids_flat = ids.reshape(NT, 1).astype(jnp.int32)
    emb_pad = jnp.zeros((VPAD, C), jnp.float32).at[:ALPHABET_SIZE].set(
        params["emb_table"].astype(jnp.float32))
    # pack the K=3 conv taps: (n_res, K, C, C) -> (n_res, K*C, C)
    res_w_packed = params["res_w"].reshape(n_res, K * C, C)
    shift = build_shift_mats(B, T, DILATIONS)

    kernel = make_text_encoder_kernel(NT, C, DILATIONS)

    def full(a):  # whole-array block spec
        return pl.BlockSpec(a.shape, lambda i, nd=a.ndim: (0,) * nd)

    args = (ids_flat, emb_pad, params["pw_w"], params["pw_b"], res_w_packed,
            params["res_b"], params["ln_g"], params["ln_b"], shift)

    out = pl.pallas_call(
        kernel,
        out_shape=jax.ShapeDtypeStruct((NT, C), jnp.float32),
        grid=(1,),                               # single invocation, whole slab
        in_specs=[full(a) for a in args],
        out_specs=pl.BlockSpec((NT, C), lambda i: (0, 0)),
        compiler_params=pltpu.CompilerParams(
            dimension_semantics=("arbitrary",)),
    )(*args)
    return out.reshape(B, T, C)


# ---------------- deterministic parameter init ----------------
def init_params(key):
    C, V, K = CHANNELS, ALPHABET_SIZE, KERNEL_SIZE
    n_res = 2 * len(DILATIONS)
    ks = jax.random.split(key, 6)
    emb = 0.1 * jax.random.normal(ks[0], (V, C), jnp.float32)
    emb = emb.at[0].set(0.0)                                   # padding_idx=0
    return dict(
        emb_table=emb,
        pw_w=0.1 * jax.random.normal(ks[1], (3, C, C), jnp.float32),   # prenet, post1, post2
        pw_b=0.01 * jax.random.normal(ks[2], (3, C), jnp.float32),
        res_w=0.1 * jax.random.normal(ks[3], (n_res, K, C, C), jnp.float32),
        res_b=0.01 * jax.random.normal(ks[4], (n_res, C), jnp.float32),
        ln_g=jnp.ones((n_res + 1, C), jnp.float32),
        ln_b=jnp.zeros((n_res + 1, C), jnp.float32),
    )


# ---------------- pure-JAX reference (for correctness check) ----------------
def text_encoder_ref(ids, params):
    K = KERNEL_SIZE
    n_res = 2 * len(DILATIONS)
    x_in = jnp.take(params["emb_table"], ids, axis=0)

    def pw(x, i):
        return jnp.einsum("btc,cd->btd", x, params["pw_w"][i]) + params["pw_b"][i]

    def ln(x, i):
        mu = x.mean(-1, keepdims=True)
        var = ((x - mu) ** 2).mean(-1, keepdims=True)
        return (x - mu) / jnp.sqrt(var + LN_EPS) * params["ln_g"][i] + params["ln_b"][i]

    def dconv(x, i, d):
        B, T, C = x.shape
        p = d * (K - 1) // 2
        xp = jnp.pad(x, ((0, 0), (p, p), (0, 0)))
        out = jnp.zeros_like(x) + params["res_b"][i]
        for j in range(K):
            out = out + jnp.einsum("btc,cd->btd",
                                   xp[:, j * d:j * d + T, :], params["res_w"][i, j])
        return out

    embedding = jax.nn.relu(pw(x_in, 0))
    x = embedding
    for bi, d in enumerate(DILATIONS):
        r = x
        for s in range(2):
            idx = 2 * bi + s
            r = dconv(ln(jax.nn.relu(r), idx), idx, d)
        x = x + r
    x = pw(x, 1) + embedding
    x = ln(jax.nn.relu(x), n_res)
    return pw(x, 2)


if __name__ == "__main__":
    key = jax.random.PRNGKey(0)
    pkey, ikey = jax.random.split(key)
    params = init_params(pkey)

    B, T = 2, 16
    ids = jax.random.randint(ikey, (B, T), 0, ALPHABET_SIZE, dtype=jnp.int32)

    out = jax.block_until_ready(text_encoder_forward(ids, params))
    ref = jax.block_until_ready(text_encoder_ref(ids, params))

    assert out.shape == (B, T, CHANNELS), out.shape
    assert bool(jnp.all(jnp.isfinite(out)))
    assert bool(jnp.allclose(out, ref, atol=1e-2, rtol=1e-2)), "mismatch vs reference"
    print("KERNEL_OK")
</pallas_src>

<mosaic_0001>
module attributes {stable_mosaic.version = 11 : i64} {
  func.func @kernel(%arg0: i32, %arg1: memref<32x1xi32, #tpu.memory_space<vmem>>, %arg2: memref<128x32xf32, #tpu.memory_space<vmem>>, %arg3: memref<3x32x32xf32, #tpu.memory_space<vmem>>, %arg4: memref<3x32xf32, #tpu.memory_space<vmem>>, %arg5: memref<6x96x32xf32, #tpu.memory_space<vmem>>, %arg6: memref<6x32xf32, #tpu.memory_space<vmem>>, %arg7: memref<7x32xf32, #tpu.memory_space<vmem>>, %arg8: memref<7x32xf32, #tpu.memory_space<vmem>>, %arg9: memref<3x2x32x32xf32, #tpu.memory_space<vmem>>, %arg10: memref<32x32xf32, #tpu.memory_space<vmem>>) attributes {dimension_semantics = [#tpu.dimension_semantics<arbitrary>], iteration_bounds = array<i64: 1>, scalar_prefetch = 0 : i64, scratch_operands = 0 : i64, tpu.core_type = #tpu.core_type<tc>, window_params = [{pipeline_mode = #tpu.pipeline_mode<synchronous>, transform_indices = @transform_0, window_bounds = array<i64: 32, 1>}, {pipeline_mode = #tpu.pipeline_mode<synchronous>, transform_indices = @transform_1, window_bounds = array<i64: 128, 32>}, {pipeline_mode = #tpu.pipeline_mode<synchronous>, transform_indices = @transform_2, window_bounds = array<i64: 3, 32, 32>}, {pipeline_mode = #tpu.pipeline_mode<synchronous>, transform_indices = @transform_3, window_bounds = array<i64: 3, 32>}, {pipeline_mode = #tpu.pipeline_mode<synchronous>, transform_indices = @transform_4, window_bounds = array<i64: 6, 96, 32>}, {pipeline_mode = #tpu.pipeline_mode<synchronous>, transform_indices = @transform_5, window_bounds = array<i64: 6, 32>}, {pipeline_mode = #tpu.pipeline_mode<synchronous>, transform_indices = @transform_6, window_bounds = array<i64: 7, 32>}, {pipeline_mode = #tpu.pipeline_mode<synchronous>, transform_indices = @transform_7, window_bounds = array<i64: 7, 32>}, {pipeline_mode = #tpu.pipeline_mode<synchronous>, transform_indices = @transform_8, window_bounds = array<i64: 3, 2, 32, 32>}, {pipeline_mode = #tpu.pipeline_mode<synchronous>, transform_indices = @transform_9, window_bounds = array<i64: 32, 32>}]} {
    %c0 = arith.constant 0 : index
    %c0_0 = arith.constant 0 : index
    %0 = vector.load %arg4[%c0, %c0_0] : memref<3x32xf32, #tpu.memory_space<vmem>>, vector<3x32xf32>
    %c0_1 = arith.constant 0 : index
    %c0_2 = arith.constant 0 : index
    %1 = vector.load %arg6[%c0_1, %c0_2] : memref<6x32xf32, #tpu.memory_space<vmem>>, vector<6x32xf32>
    %c0_3 = arith.constant 0 : index
    %c0_4 = arith.constant 0 : index
    %2 = vector.load %arg7[%c0_3, %c0_4] : memref<7x32xf32, #tpu.memory_space<vmem>>, vector<7x32xf32>
    %c0_5 = arith.constant 0 : index
    %c0_6 = arith.constant 0 : index
    %3 = vector.load %arg8[%c0_5, %c0_6] : memref<7x32xf32, #tpu.memory_space<vmem>>, vector<7x32xf32>
    %c0_7 = arith.constant 0 : index
    %c0_8 = arith.constant 0 : index
    %4 = vector.load %arg1[%c0_7, %c0_8] : memref<32x1xi32, #tpu.memory_space<vmem>>, vector<32x1xi32>
    %5 = tpu.iota {dimensions = array<i32: 1>} : vector<32x128xi32>
    %6 = vector.broadcast %4 : vector<32x1xi32> to vector<32x128xi32>
    %7 = arith.cmpi eq, %5, %6 : vector<32x128xi32>
    %8 = arith.extui %7 : vector<32x128xi1> to vector<32x128xi32>
    %9 = arith.sitofp %8 : vector<32x128xi32> to vector<32x128xf32>
    %c0_9 = arith.constant 0 : index
    %c0_10 = arith.constant 0 : index
    %10 = vector.load %arg2[%c0_9, %c0_10] : memref<128x32xf32, #tpu.memory_space<vmem>>, vector<128x32xf32>
    %cst = arith.constant dense<0.000000e+00> : vector<32x32xf32>
    %11 = tpu.matmul %9, %10, %cst {dimension_numbers = #tpu.dot_dimension_numbers<[1], [0], [0], [1], [0, 0, 1, 1], [], []>} : vector<32x128xf32>, vector<128x32xf32>, vector<32x32xf32> -> vector<32x32xf32>
    %c0_11 = arith.constant 0 : index
    %c0_12 = arith.constant 0 : index
    %c0_13 = arith.constant 0 : index
    %12 = vector.load %arg3[%c0_11, %c0_12, %c0_13] : memref<3x32x32xf32, #tpu.memory_space<vmem>>, vector<1x32x32xf32>
    %13 = vector.shape_cast %12 : vector<1x32x32xf32> to vector<32x32xf32>
    %cst_14 = arith.constant dense<0.000000e+00> : vector<32x32xf32>
    %14 = tpu.matmul %11, %13, %cst_14 {dimension_numbers = #tpu.dot_dimension_numbers<[1], [0], [0], [1], [0, 0, 1, 1], [], []>} : vector<32x32xf32>, vector<32x32xf32>, vector<32x32xf32> -> vector<32x32xf32>
    %15 = vector.extract_strided_slice %0 {offsets = [0, 0], sizes = [1, 32], strides = [1, 1]} : vector<3x32xf32> to vector<1x32xf32>
    %16 = vector.broadcast %15 : vector<1x32xf32> to vector<32x32xf32>
    %17 = arith.addf %14, %16 : vector<32x32xf32>
    %cst_15 = arith.constant 0.000000e+00 : f32
    %18 = vector.broadcast %cst_15 : f32 to vector<32x32xf32>
    %19 = arith.maximumf %17, %18 : vector<32x32xf32>
    %cst_16 = arith.constant 0.000000e+00 : f32
    %20 = vector.broadcast %cst_16 : f32 to vector<32x32xf32>
    %21 = arith.maximumf %19, %20 : vector<32x32xf32>
    %cst_17 = arith.constant dense<0.000000e+00> : vector<32xf32>
    %22 = vector.multi_reduction <add>, %21, %cst_17 [1] : vector<32x32xf32> to vector<32xf32>
    %23 = vector.shape_cast %22 : vector<32xf32> to vector<32x1xf32>
    %cst_18 = arith.constant 3.200000e+01 : f32
    %24 = vector.broadcast %cst_18 : f32 to vector<32x1xf32>
    %25 = arith.divf %23, %24 : vector<32x1xf32>
    %26 = vector.broadcast %25 : vector<32x1xf32> to vector<32x32xf32>
    %27 = arith.subf %21, %26 : vector<32x32xf32>
    %28 = vector.broadcast %25 : vector<32x1xf32> to vector<32x32xf32>
    %29 = arith.subf %21, %28 : vector<32x32xf32>
    %30 = arith.mulf %27, %29 : vector<32x32xf32>
    %cst_19 = arith.constant dense<0.000000e+00> : vector<32xf32>
    %31 = vector.multi_reduction <add>, %30, %cst_19 [1] : vector<32x32xf32> to vector<32xf32>
    %32 = vector.shape_cast %31 : vector<32xf32> to vector<32x1xf32>
    %cst_20 = arith.constant 3.200000e+01 : f32
    %33 = vector.broadcast %cst_20 : f32 to vector<32x1xf32>
    %34 = arith.divf %32, %33 : vector<32x1xf32>
    %35 = vector.broadcast %25 : vector<32x1xf32> to vector<32x32xf32>
    %36 = arith.subf %21, %35 : vector<32x32xf32>
    %cst_21 = arith.constant 9.99999974E-6 : f32
    %37 = vector.broadcast %cst_21 : f32 to vector<32x1xf32>
    %38 = arith.addf %34, %37 : vector<32x1xf32>
    %39 = math.rsqrt %38 : vector<32x1xf32>
    %40 = vector.broadcast %39 : vector<32x1xf32> to vector<32x32xf32>
    %41 = arith.mulf %36, %40 : vector<32x32xf32>
    %42 = vector.extract_strided_slice %2 {offsets = [0, 0], sizes = [1, 32], strides = [1, 1]} : vector<7x32xf32> to vector<1x32xf32>
    %43 = vector.broadcast %42 : vector<1x32xf32> to vector<32x32xf32>
    %44 = arith.mulf %41, %43 : vector<32x32xf32>
    %45 = vector.extract_strided_slice %3 {offsets = [0, 0], sizes = [1, 32], strides = [1, 1]} : vector<7x32xf32> to vector<1x32xf32>
    %46 = vector.broadcast %45 : vector<1x32xf32> to vector<32x32xf32>
    %47 = arith.addf %44, %46 : vector<32x32xf32>
    %c0_22 = arith.constant 0 : index
    %c0_23 = arith.constant 0 : index
    %c0_24 = arith.constant 0 : index
    %c0_25 = arith.constant 0 : index
    %48 = vector.load %arg9[%c0_22, %c0_23, %c0_24, %c0_25] : memref<3x2x32x32xf32, #tpu.memory_space<vmem>>, vector<1x1x32x32xf32>
    %49 = vector.shape_cast %48 : vector<1x1x32x32xf32> to vector<32x32xf32>
    %cst_26 = arith.constant dense<0.000000e+00> : vector<32x32xf32>
    %50 = tpu.matmul %49, %47, %cst_26 {dimension_numbers = #tpu.dot_dimension_numbers<[1], [0], [0], [1], [0, 0, 1, 1], [], []>} : vector<32x32xf32>, vector<32x32xf32>, vector<32x32xf32> -> vector<32x32xf32>
    %c0_27 = arith.constant 0 : index
    %c1 = arith.constant 1 : index
    %c0_28 = arith.constant 0 : index
    %c0_29 = arith.constant 0 : index
    %51 = vector.load %arg9[%c0_27, %c1, %c0_28, %c0_29] : memref<3x2x32x32xf32, #tpu.memory_space<vmem>>, vector<1x1x32x32xf32>
    %52 = vector.shape_cast %51 : vector<1x1x32x32xf32> to vector<32x32xf32>
    %cst_30 = arith.constant dense<0.000000e+00> : vector<32x32xf32>
    %53 = tpu.matmul %52, %47, %cst_30 {dimension_numbers = #tpu.dot_dimension_numbers<[1], [0], [0], [1], [0, 0, 1, 1], [], []>} : vector<32x32xf32>, vector<32x32xf32>, vector<32x32xf32> -> vector<32x32xf32>
    %54 = tpu.concatenate %50, %47, %53 in 1 : vector<32x32xf32>, vector<32x32xf32>, vector<32x32xf32> -> vector<32x96xf32>
    %c0_31 = arith.constant 0 : index
    %c0_32 = arith.constant 0 : index
    %c0_33 = arith.constant 0 : index
    %55 = vector.load %arg5[%c0_31, %c0_32, %c0_33] : memref<6x96x32xf32, #tpu.memory_space<vmem>>, vector<1x96x32xf32>
    %56 = vector.shape_cast %55 : vector<1x96x32xf32> to vector<96x32xf32>
    %cst_34 = arith.constant dense<0.000000e+00> : vector<32x32xf32>
    %57 = tpu.matmul %54, %56, %cst_34 {dimension_numbers = #tpu.dot_dimension_numbers<[1], [0], [0], [1], [0, 0, 1, 1], [], []>} : vector<32x96xf32>, vector<96x32xf32>, vector<32x32xf32> -> vector<32x32xf32>
    %58 = vector.extract_strided_slice %1 {offsets = [0, 0], sizes = [1, 32], strides = [1, 1]} : vector<6x32xf32> to vector<1x32xf32>
    %59 = vector.broadcast %58 : vector<1x32xf32> to vector<32x32xf32>
    %60 = arith.addf %57, %59 : vector<32x32xf32>
    %cst_35 = arith.constant 0.000000e+00 : f32
    %61 = vector.broadcast %cst_35 : f32 to vector<32x32xf32>
    %62 = arith.maximumf %60, %61 : vector<32x32xf32>
    %cst_36 = arith.constant dense<0.000000e+00> : vector<32xf32>
    %63 = vector.multi_reduction <add>, %62, %cst_36 [1] : vector<32x32xf32> to vector<32xf32>
    %64 = vector.shape_cast %63 : vector<32xf32> to vector<32x1xf32>
    %cst_37 = arith.constant 3.200000e+01 : f32
    %65 = vector.broadcast %cst_37 : f32 to vector<32x1xf32>
    %66 = arith.divf %64, %65 : vector<32x1xf32>
    %67 = vector.broadcast %66 : vector<32x1xf32> to vector<32x32xf32>
    %68 = arith.subf %62, %67 : vector<32x32xf32>
    %69 = vector.broadcast %66 : vector<32x1xf32> to vector<32x32xf32>
    %70 = arith.subf %62, %69 : vector<32x32xf32>
    %71 = arith.mulf %68, %70 : vector<32x32xf32>
    %cst_38 = arith.constant dense<0.000000e+00> : vector<32xf32>
    %72 = vector.multi_reduction <add>, %71, %cst_38 [1] : vector<32x32xf32> to vector<32xf32>
    %73 = vector.shape_cast %72 : vector<32xf32> to vector<32x1xf32>
    %cst_39 = arith.constant 3.200000e+01 : f32
    %74 = vector.broadcast %cst_39 : f32 to vector<32x1xf32>
    %75 = arith.divf %73, %74 : vector<32x1xf32>
    %76 = vector.broadcast %66 : vector<32x1xf32> to vector<32x32xf32>
    %77 = arith.subf %62, %76 : vector<32x32xf32>
    %cst_40 = arith.constant 9.99999974E-6 : f32
    %78 = vector.broadcast %cst_40 : f32 to vector<32x1xf32>
    %79 = arith.addf %75, %78 : vector<32x1xf32>
    %80 = math.rsqrt %79 : vector<32x1xf32>
    %81 = vector.broadcast %80 : vector<32x1xf32> to vector<32x32xf32>
    %82 = arith.mulf %77, %81 : vector<32x32xf32>
    %83 = vector.extract_strided_slice %2 {offsets = [1, 0], sizes = [1, 32], strides = [1, 1]} : vector<7x32xf32> to vector<1x32xf32>
    %84 = vector.broadcast %83 : vector<1x32xf32> to vector<32x32xf32>
    %85 = arith.mulf %82, %84 : vector<32x32xf32>
    %86 = vector.extract_strided_slice %3 {offsets = [1, 0], sizes = [1, 32], strides = [1, 1]} : vector<7x32xf32> to vector<1x32xf32>
    %87 = vector.broadcast %86 : vector<1x32xf32> to vector<32x32xf32>
    %88 = arith.addf %85, %87 : vector<32x32xf32>
    %c0_41 = arith.constant 0 : index
    %c0_42 = arith.constant 0 : index
    %c0_43 = arith.constant 0 : index
    %c0_44 = arith.constant 0 : index
    %89 = vector.load %arg9[%c0_41, %c0_42, %c0_43, %c0_44] : memref<3x2x32x32xf32, #tpu.memory_space<vmem>>, vector<1x1x32x32xf32>
    %90 = vector.shape_cast %89 : vector<1x1x32x32xf32> to vector<32x32xf32>
    %cst_45 = arith.constant dense<0.000000e+00> : vector<32x32xf32>
    %91 = tpu.matmul %90, %88, %cst_45 {dimension_numbers = #tpu.dot_dimension_numbers<[1], [0], [0], [1], [0, 0, 1, 1], [], []>} : vector<32x32xf32>, vector<32x32xf32>, vector<32x32xf32> -> vector<32x32xf32>
    %c0_46 = arith.constant 0 : index
    %c1_47 = arith.constant 1 : index
    %c0_48 = arith.constant 0 : index
    %c0_49 = arith.constant 0 : index
    %92 = vector.load %arg9[%c0_46, %c1_47, %c0_48, %c0_49] : memref<3x2x32x32xf32, #tpu.memory_space<vmem>>, vector<1x1x32x32xf32>
    %93 = vector.shape_cast %92 : vector<1x1x32x32xf32> to vector<32x32xf32>
    %cst_50 = arith.constant dense<0.000000e+00> : vector<32x32xf32>
    %94 = tpu.matmul %93, %88, %cst_50 {dimension_numbers = #tpu.dot_dimension_numbers<[1], [0], [0], [1], [0, 0, 1, 1], [], []>} : vector<32x32xf32>, vector<32x32xf32>, vector<32x32xf32> -> vector<32x32xf32>
    %95 = tpu.concatenate %91, %88, %94 in 1 : vector<32x32xf32>, vector<32x32xf32>, vector<32x32xf32> -> vector<32x96xf32>
    %c1_51 = arith.constant 1 : index
    %c0_52 = arith.constant 0 : index
    %c0_53 = arith.constant 0 : index
    %96 = vector.load %arg5[%c1_51, %c0_52, %c0_53] : memref<6x96x32xf32, #tpu.memory_space<vmem>>, vector<1x96x32xf32>
    %97 = vector.shape_cast %96 : vector<1x96x32xf32> to vector<96x32xf32>
    %cst_54 = arith.constant dense<0.000000e+00> : vector<32x32xf32>
    %98 = tpu.matmul %95, %97, %cst_54 {dimension_numbers = #tpu.dot_dimension_numbers<[1], [0], [0], [1], [0, 0, 1, 1], [], []>} : vector<32x96xf32>, vector<96x32xf32>, vector<32x32xf32> -> vector<32x32xf32>
    %99 = vector.extract_strided_slice %1 {offsets = [1, 0], sizes = [1, 32], strides = [1, 1]} : vector<6x32xf32> to vector<1x32xf32>
    %100 = vector.broadcast %99 : vector<1x32xf32> to vector<32x32xf32>
    %101 = arith.addf %98, %100 : vector<32x32xf32>
    %102 = arith.addf %19, %101 : vector<32x32xf32>
    %cst_55 = arith.constant 0.000000e+00 : f32
    %103 = vector.broadcast %cst_55 : f32 to vector<32x32xf32>
    %104 = arith.maximumf %102, %103 : vector<32x32xf32>
    %cst_56 = arith.constant dense<0.000000e+00> : vector<32xf32>
    %105 = vector.multi_reduction <add>, %104, %cst_56 [1] : vector<32x32xf32> to vector<32xf32>
    %106 = vector.shape_cast %105 : vector<32xf32> to vector<32x1xf32>
    %cst_57 = arith.constant 3.200000e+01 : f32
    %107 = vector.broadcast %cst_57 : f32 to vector<32x1xf32>
    %108 = arith.divf %106, %107 : vector<32x1xf32>
    %109 = vector.broadcast %108 : vector<32x1xf32> to vector<32x32xf32>
    %110 = arith.subf %104, %109 : vector<32x32xf32>
    %111 = vector.broadcast %108 : vector<32x1xf32> to vector<32x32xf32>
    %112 = arith.subf %104, %111 : vector<32x32xf32>
    %113 = arith.mulf %110, %112 : vector<32x32xf32>
    %cst_58 = arith.constant dense<0.000000e+00> : vector<32xf32>
    %114 = vector.multi_reduction <add>, %113, %cst_58 [1] : vector<32x32xf32> to vector<32xf32>
    %115 = vector.shape_cast %114 : vector<32xf32> to vector<32x1xf32>
    %cst_59 = arith.constant 3.200000e+01 : f32
    %116 = vector.broadcast %cst_59 : f32 to vector<32x1xf32>
    %117 = arith.divf %115, %116 : vector<32x1xf32>
    %118 = vector.broadcast %108 : vector<32x1xf32> to vector<32x32xf32>
    %119 = arith.subf %104, %118 : vector<32x32xf32>
    %cst_60 = arith.constant 9.99999974E-6 : f32
    %120 = vector.broadcast %cst_60 : f32 to vector<32x1xf32>
    %121 = arith.addf %117, %120 : vector<32x1xf32>
    %122 = math.rsqrt %121 : vector<32x1xf32>
    %123 = vector.broadcast %122 : vector<32x1xf32> to vector<32x32xf32>
    %124 = arith.mulf %119, %123 : vector<32x32xf32>
    %125 = vector.extract_strided_slice %2 {offsets = [2, 0], sizes = [1, 32], strides = [1, 1]} : vector<7x32xf32> to vector<1x32xf32>
    %126 = vector.broadcast %125 : vector<1x32xf32> to vector<32x32xf32>
    %127 = arith.mulf %124, %126 : vector<32x32xf32>
    %128 = vector.extract_strided_slice %3 {offsets = [2, 0], sizes = [1, 32], strides = [1, 1]} : vector<7x32xf32> to vector<1x32xf32>
    %129 = vector.broadcast %128 : vector<1x32xf32> to vector<32x32xf32>
    %130 = arith.addf %127, %129 : vector<32x32xf32>
    %c1_61 = arith.constant 1 : index
    %c0_62 = arith.constant 0 : index
    %c0_63 = arith.constant 0 : index
    %c0_64 = arith.constant 0 : index
    %131 = vector.load %arg9[%c1_61, %c0_62, %c0_63, %c0_64] : memref<3x2x32x32xf32, #tpu.memory_space<vmem>>, vector<1x1x32x32xf32>
    %132 = vector.shape_cast %131 : vector<1x1x32x32xf32> to vector<32x32xf32>
    %cst_65 = arith.constant dense<0.000000e+00> : vector<32x32xf32>
    %133 = tpu.matmul %132, %130, %cst_65 {dimension_numbers = #tpu.dot_dimension_numbers<[1], [0], [0], [1], [0, 0, 1, 1], [], []>} : vector<32x32xf32>, vector<32x32xf32>, vector<32x32xf32> -> vector<32x32xf32>
    %c1_66 = arith.constant 1 : index
    %c1_67 = arith.constant 1 : index
    %c0_68 = arith.constant 0 : index
    %c0_69 = arith.constant 0 : index
    %134 = vector.load %arg9[%c1_66, %c1_67, %c0_68, %c0_69] : memref<3x2x32x32xf32, #tpu.memory_space<vmem>>, vector<1x1x32x32xf32>
    %135 = vector.shape_cast %134 : vector<1x1x32x32xf32> to vector<32x32xf32>
    %cst_70 = arith.constant dense<0.000000e+00> : vector<32x32xf32>
    %136 = tpu.matmul %135, %130, %cst_70 {dimension_numbers = #tpu.dot_dimension_numbers<[1], [0], [0], [1], [0, 0, 1, 1], [], []>} : vector<32x32xf32>, vector<32x32xf32>, vector<32x32xf32> -> vector<32x32xf32>
    %137 = tpu.concatenate %133, %130, %136 in 1 : vector<32x32xf32>, vector<32x32xf32>, vector<32x32xf32> -> vector<32x96xf32>
    %c2 = arith.constant 2 : index
    %c0_71 = arith.constant 0 : index
    %c0_72 = arith.constant 0 : index
    %138 = vector.load %arg5[%c2, %c0_71, %c0_72] : memref<6x96x32xf32, #tpu.memory_space<vmem>>, vector<1x96x32xf32>
    %139 = vector.shape_cast %138 : vector<1x96x32xf32> to vector<96x32xf32>
    %cst_73 = arith.constant dense<0.000000e+00> : vector<32x32xf32>
    %140 = tpu.matmul %137, %139, %cst_73 {dimension_numbers = #tpu.dot_dimension_numbers<[1], [0], [0], [1], [0, 0, 1, 1], [], []>} : vector<32x96xf32>, vector<96x32xf32>, vector<32x32xf32> -> vector<32x32xf32>
    %141 = vector.extract_strided_slice %1 {offsets = [2, 0], sizes = [1, 32], strides = [1, 1]} : vector<6x32xf32> to vector<1x32xf32>
    %142 = vector.broadcast %141 : vector<1x32xf32> to vector<32x32xf32>
    %143 = arith.addf %140, %142 : vector<32x32xf32>
    %cst_74 = arith.constant 0.000000e+00 : f32
    %144 = vector.broadcast %cst_74 : f32 to vector<32x32xf32>
    %145 = arith.maximumf %143, %144 : vector<32x32xf32>
    %cst_75 = arith.constant dense<0.000000e+00> : vector<32xf32>
    %146 = vector.multi_reduction <add>, %145, %cst_75 [1] : vector<32x32xf32> to vector<32xf32>
    %147 = vector.shape_cast %146 : vector<32xf32> to vector<32x1xf32>
    %cst_76 = arith.constant 3.200000e+01 : f32
    %148 = vector.broadcast %cst_76 : f32 to vector<32x1xf32>
    %149 = arith.divf %147, %148 : vector<32x1xf32>
    %150 = vector.broadcast %149 : vector<32x1xf32> to vector<32x32xf32>
    %151 = arith.subf %145, %150 : vector<32x32xf32>
    %152 = vector.broadcast %149 : vector<32x1xf32> to vector<32x32xf32>
    %153 = arith.subf %145, %152 : vector<32x32xf32>
    %154 = arith.mulf %151, %153 : vector<32x32xf32>
    %cst_77 = arith.constant dense<0.000000e+00> : vector<32xf32>
    %155 = vector.multi_reduction <add>, %154, %cst_77 [1] : vector<32x32xf32> to vector<32xf32>
    %156 = vector.shape_cast %155 : vector<32xf32> to vector<32x1xf32>
    %cst_78 = arith.constant 3.200000e+01 : f32
    %157 = vector.broadcast %cst_78 : f32 to vector<32x1xf32>
    %158 = arith.divf %156, %157 : vector<32x1xf32>
    %159 = vector.broadcast %149 : vector<32x1xf32> to vector<32x32xf32>
    %160 = arith.subf %145, %159 : vector<32x32xf32>
    %cst_79 = arith.constant 9.99999974E-6 : f32
    %161 = vector.broadcast %cst_79 : f32 to vector<32x1xf32>
    %162 = arith.addf %158, %161 : vector<32x1xf32>
    %163 = math.rsqrt %162 : vector<32x1xf32>
    %164 = vector.broadcast %163 : vector<32x1xf32> to vector<32x32xf32>
    %165 = arith.mulf %160, %164 : vector<32x32xf32>
    %166 = vector.extract_strided_slice %2 {offsets = [3, 0], sizes = [1, 32], strides = [1, 1]} : vector<7x32xf32> to vector<1x32xf32>
    %167 = vector.broadcast %166 : vector<1x32xf32> to vector<32x32xf32>
    %168 = arith.mulf %165, %167 : vector<32x32xf32>
    %169 = vector.extract_strided_slice %3 {offsets = [3, 0], sizes = [1, 32], strides = [1, 1]} : vector<7x32xf32> to vector<1x32xf32>
    %170 = vector.broadcast %169 : vector<1x32xf32> to vector<32x32xf32>
    %171 = arith.addf %168, %170 : vector<32x32xf32>
    %c1_80 = arith.constant 1 : index
    %c0_81 = arith.constant 0 : index
    %c0_82 = arith.constant 0 : index
    %c0_83 = arith.constant 0 : index
    %172 = vector.load %arg9[%c1_80, %c0_81, %c0_82, %c0_83] : memref<3x2x32x32xf32, #tpu.memory_space<vmem>>, vector<1x1x32x32xf32>
    %173 = vector.shape_cast %172 : vector<1x1x32x32xf32> to vector<32x32xf32>
    %cst_84 = arith.constant dense<0.000000e+00> : vector<32x32xf32>
    %174 = tpu.matmul %173, %171, %cst_84 {dimension_numbers = #tpu.dot_dimension_numbers<[1], [0], [0], [1], [0, 0, 1, 1], [], []>} : vector<32x32xf32>, vector<32x32xf32>, vector<32x32xf32> -> vector<32x32xf32>
    %c1_85 = arith.constant 1 : index
    %c1_86 = arith.constant 1 : index
    %c0_87 = arith.constant 0 : index
    %c0_88 = arith.constant 0 : index
    %175 = vector.load %arg9[%c1_85, %c1_86, %c0_87, %c0_88] : memref<3x2x32x32xf32, #tpu.memory_space<vmem>>, vector<1x1x32x32xf32>
    %176 = vector.shape_cast %175 : vector<1x1x32x32xf32> to vector<32x32xf32>
    %cst_89 = arith.constant dense<0.000000e+00> : vector<32x32xf32>
    %177 = tpu.matmul %176, %171, %cst_89 {dimension_numbers = #tpu.dot_dimension_numbers<[1], [0], [0], [1], [0, 0, 1, 1], [], []>} : vector<32x32xf32>, vector<32x32xf32>, vector<32x32xf32> -> vector<32x32xf32>
    %178 = tpu.concatenate %174, %171, %177 in 1 : vector<32x32xf32>, vector<32x32xf32>, vector<32x32xf32> -> vector<32x96xf32>
    %c3 = arith.constant 3 : index
    %c0_90 = arith.constant 0 : index
    %c0_91 = arith.constant 0 : index
    %179 = vector.load %arg5[%c3, %c0_90, %c0_91] : memref<6x96x32xf32, #tpu.memory_space<vmem>>, vector<1x96x32xf32>
    %180 = vector.shape_cast %179 : vector<1x96x32xf32> to vector<96x32xf32>
    %cst_92 = arith.constant dense<0.000000e+00> : vector<32x32xf32>
    %181 = tpu.matmul %178, %180, %cst_92 {dimension_numbers = #tpu.dot_dimension_numbers<[1], [0], [0], [1], [0, 0, 1, 1], [], []>} : vector<32x96xf32>, vector<96x32xf32>, vector<32x32xf32> -> vector<32x32xf32>
    %182 = vector.extract_strided_slice %1 {offsets = [3, 0], sizes = [1, 32], strides = [1, 1]} : vector<6x32xf32> to vector<1x32xf32>
    %183 = vector.broadcast %182 : vector<1x32xf32> to vector<32x32xf32>
    %184 = arith.addf %181, %183 : vector<32x32xf32>
    %185 = arith.addf %102, %184 : vector<32x32xf32>
    %cst_93 = arith.constant 0.000000e+00 : f32
    %186 = vector.broadcast %cst_93 : f32 to vector<32x32xf32>
    %187 = arith.maximumf %185, %186 : vector<32x32xf32>
    %cst_94 = arith.constant dense<0.000000e+00> : vector<32xf32>
    %188 = vector.multi_reduction <add>, %187, %cst_94 [1] : vector<32x32xf32> to vector<32xf32>
    %189 = vector.shape_cast %188 : vector<32xf32> to vector<32x1xf32>
    %cst_95 = arith.constant 3.200000e+01 : f32
    %190 = vector.broadcast %cst_95 : f32 to vector<32x1xf32>
    %191 = arith.divf %189, %190 : vector<32x1xf32>
    %192 = vector.broadcast %191 : vector<32x1xf32> to vector<32x32xf32>
    %193 = arith.subf %187, %192 : vector<32x32xf32>
    %194 = vector.broadcast %191 : vector<32x1xf32> to vector<32x32xf32>
    %195 = arith.subf %187, %194 : vector<32x32xf32>
    %196 = arith.mulf %193, %195 : vector<32x32xf32>
    %cst_96 = arith.constant dense<0.000000e+00> : vector<32xf32>
    %197 = vector.multi_reduction <add>, %196, %cst_96 [1] : vector<32x32xf32> to vector<32xf32>
    %198 = vector.shape_cast %197 : vector<32xf32> to vector<32x1xf32>
    %cst_97 = arith.constant 3.200000e+01 : f32
    %199 = vector.broadcast %cst_97 : f32 to vector<32x1xf32>
    %200 = arith.divf %198, %199 : vector<32x1xf32>
    %201 = vector.broadcast %191 : vector<32x1xf32> to vector<32x32xf32>
    %202 = arith.subf %187, %201 : vector<32x32xf32>
    %cst_98 = arith.constant 9.99999974E-6 : f32
    %203 = vector.broadcast %cst_98 : f32 to vector<32x1xf32>
    %204 = arith.addf %200, %203 : vector<32x1xf32>
    %205 = math.rsqrt %204 : vector<32x1xf32>
    %206 = vector.broadcast %205 : vector<32x1xf32> to vector<32x32xf32>
    %207 = arith.mulf %202, %206 : vector<32x32xf32>
    %208 = vector.extract_strided_slice %2 {offsets = [4, 0], sizes = [1, 32], strides = [1, 1]} : vector<7x32xf32> to vector<1x32xf32>
    %209 = vector.broadcast %208 : vector<1x32xf32> to vector<32x32xf32>
    %210 = arith.mulf %207, %209 : vector<32x32xf32>
    %211 = vector.extract_strided_slice %3 {offsets = [4, 0], sizes = [1, 32], strides = [1, 1]} : vector<7x32xf32> to vector<1x32xf32>
    %212 = vector.broadcast %211 : vector<1x32xf32> to vector<32x32xf32>
    %213 = arith.addf %210, %212 : vector<32x32xf32>
    %c2_99 = arith.constant 2 : index
    %c0_100 = arith.constant 0 : index
    %c0_101 = arith.constant 0 : index
    %c0_102 = arith.constant 0 : index
    %214 = vector.load %arg9[%c2_99, %c0_100, %c0_101, %c0_102] : memref<3x2x32x32xf32, #tpu.memory_space<vmem>>, vector<1x1x32x32xf32>
    %215 = vector.shape_cast %214 : vector<1x1x32x32xf32> to vector<32x32xf32>
    %cst_103 = arith.constant dense<0.000000e+00> : vector<32x32xf32>
    %216 = tpu.matmul %215, %213, %cst_103 {dimension_numbers = #tpu.dot_dimension_numbers<[1], [0], [0], [1], [0, 0, 1, 1], [], []>} : vector<32x32xf32>, vector<32x32xf32>, vector<32x32xf32> -> vector<32x32xf32>
    %c2_104 = arith.constant 2 : index
    %c1_105 = arith.constant 1 : index
    %c0_106 = arith.constant 0 : index
    %c0_107 = arith.constant 0 : index
    %217 = vector.load %arg9[%c2_104, %c1_105, %c0_106, %c0_107] : memref<3x2x32x32xf32, #tpu.memory_space<vmem>>, vector<1x1x32x32xf32>
    %218 = vector.shape_cast %217 : vector<1x1x32x32xf32> to vector<32x32xf32>
    %cst_108 = arith.constant dense<0.000000e+00> : vector<32x32xf32>
    %219 = tpu.matmul %218, %213, %cst_108 {dimension_numbers = #tpu.dot_dimension_numbers<[1], [0], [0], [1], [0, 0, 1, 1], [], []>} : vector<32x32xf32>, vector<32x32xf32>, vector<32x32xf32> -> vector<32x32xf32>
    %220 = tpu.concatenate %216, %213, %219 in 1 : vector<32x32xf32>, vector<32x32xf32>, vector<32x32xf32> -> vector<32x96xf32>
    %c4 = arith.constant 4 : index
    %c0_109 = arith.constant 0 : index
    %c0_110 = arith.constant 0 : index
    %221 = vector.load %arg5[%c4, %c0_109, %c0_110] : memref<6x96x32xf32, #tpu.memory_space<vmem>>, vector<1x96x32xf32>
    %222 = vector.shape_cast %221 : vector<1x96x32xf32> to vector<96x32xf32>
    %cst_111 = arith.constant dense<0.000000e+00> : vector<32x32xf32>
    %223 = tpu.matmul %220, %222, %cst_111 {dimension_numbers = #tpu.dot_dimension_numbers<[1], [0], [0], [1], [0, 0, 1, 1], [], []>} : vector<32x96xf32>, vector<96x32xf32>, vector<32x32xf32> -> vector<32x32xf32>
    %224 = vector.extract_strided_slice %1 {offsets = [4, 0], sizes = [1, 32], strides = [1, 1]} : vector<6x32xf32> to vector<1x32xf32>
    %225 = vector.broadcast %224 : vector<1x32xf32> to vector<32x32xf32>
    %226 = arith.addf %223, %225 : vector<32x32xf32>
    %cst_112 = arith.constant 0.000000e+00 : f32
    %227 = vector.broadcast %cst_112 : f32 to vector<32x32xf32>
    %228 = arith.maximumf %226, %227 : vector<32x32xf32>
    %cst_113 = arith.constant dense<0.000000e+00> : vector<32xf32>
    %229 = vector.multi_reduction <add>, %228, %cst_113 [1] : vector<32x32xf32> to vector<32xf32>
    %230 = vector.shape_cast %229 : vector<32xf32> to vector<32x1xf32>
    %cst_114 = arith.constant 3.200000e+01 : f32
    %231 = vector.broadcast %cst_114 : f32 to vector<32x1xf32>
    %232 = arith.divf %230, %231 : vector<32x1xf32>
    %233 = vector.broadcast %232 : vector<32x1xf32> to vector<32x32xf32>
    %234 = arith.subf %228, %233 : vector<32x32xf32>
    %235 = vector.broadcast %232 : vector<32x1xf32> to vector<32x32xf32>
    %236 = arith.subf %228, %235 : vector<32x32xf32>
    %237 = arith.mulf %234, %236 : vector<32x32xf32>
    %cst_115 = arith.constant dense<0.000000e+00> : vector<32xf32>
    %238 = vector.multi_reduction <add>, %237, %cst_115 [1] : vector<32x32xf32> to vector<32xf32>
    %239 = vector.shape_cast %238 : vector<32xf32> to vector<32x1xf32>
    %cst_116 = arith.constant 3.200000e+01 : f32
    %240 = vector.broadcast %cst_116 : f32 to vector<32x1xf32>
    %241 = arith.divf %239, %240 : vector<32x1xf32>
    %242 = vector.broadcast %232 : vector<32x1xf32> to vector<32x32xf32>
    %243 = arith.subf %228, %242 : vector<32x32xf32>
    %cst_117 = arith.constant 9.99999974E-6 : f32
    %244 = vector.broadcast %cst_117 : f32 to vector<32x1xf32>
    %245 = arith.addf %241, %244 : vector<32x1xf32>
    %246 = math.rsqrt %245 : vector<32x1xf32>
    %247 = vector.broadcast %246 : vector<32x1xf32> to vector<32x32xf32>
    %248 = arith.mulf %243, %247 : vector<32x32xf32>
    %249 = vector.extract_strided_slice %2 {offsets = [5, 0], sizes = [1, 32], strides = [1, 1]} : vector<7x32xf32> to vector<1x32xf32>
    %250 = vector.broadcast %249 : vector<1x32xf32> to vector<32x32xf32>
    %251 = arith.mulf %248, %250 : vector<32x32xf32>
    %252 = vector.extract_strided_slice %3 {offsets = [5, 0], sizes = [1, 32], strides = [1, 1]} : vector<7x32xf32> to vector<1x32xf32>
    %253 = vector.broadcast %252 : vector<1x32xf32> to vector<32x32xf32>
    %254 = arith.addf %251, %253 : vector<32x32xf32>
    %c2_118 = arith.constant 2 : index
    %c0_119 = arith.constant 0 : index
    %c0_120 = arith.constant 0 : index
    %c0_121 = arith.constant 0 : index
    %255 = vector.load %arg9[%c2_118, %c0_119, %c0_120, %c0_121] : memref<3x2x32x32xf32, #tpu.memory_space<vmem>>, vector<1x1x32x32xf32>
    %256 = vector.shape_cast %255 : vector<1x1x32x32xf32> to vector<32x32xf32>
    %cst_122 = arith.constant dense<0.000000e+00> : vector<32x32xf32>
    %257 = tpu.matmul %256, %254, %cst_122 {dimension_numbers = #tpu.dot_dimension_numbers<[1], [0], [0], [1], [0, 0, 1, 1], [], []>} : vector<32x32xf32>, vector<32x32xf32>, vector<32x32xf32> -> vector<32x32xf32>
    %c2_123 = arith.constant 2 : index
    %c1_124 = arith.constant 1 : index
    %c0_125 = arith.constant 0 : index
    %c0_126 = arith.constant 0 : index
    %258 = vector.load %arg9[%c2_123, %c1_124, %c0_125, %c0_126] : memref<3x2x32x32xf32, #tpu.memory_space<vmem>>, vector<1x1x32x32xf32>
    %259 = vector.shape_cast %258 : vector<1x1x32x32xf32> to vector<32x32xf32>
    %cst_127 = arith.constant dense<0.000000e+00> : vector<32x32xf32>
    %260 = tpu.matmul %259, %254, %cst_127 {dimension_numbers = #tpu.dot_dimension_numbers<[1], [0], [0], [1], [0, 0, 1, 1], [], []>} : vector<32x32xf32>, vector<32x32xf32>, vector<32x32xf32> -> vector<32x32xf32>
    %261 = tpu.concatenate %257, %254, %260 in 1 : vector<32x32xf32>, vector<32x32xf32>, vector<32x32xf32> -> vector<32x96xf32>
    %c5 = arith.constant 5 : index
    %c0_128 = arith.constant 0 : index
    %c0_129 = arith.constant 0 : index
    %262 = vector.load %arg5[%c5, %c0_128, %c0_129] : memref<6x96x32xf32, #tpu.memory_space<vmem>>, vector<1x96x32xf32>
    %263 = vector.shape_cast %262 : vector<1x96x32xf32> to vector<96x32xf32>
    %cst_130 = arith.constant dense<0.000000e+00> : vector<32x32xf32>
    %264 = tpu.matmul %261, %263, %cst_130 {dimension_numbers = #tpu.dot_dimension_numbers<[1], [0], [0], [1], [0, 0, 1, 1], [], []>} : vector<32x96xf32>, vector<96x32xf32>, vector<32x32xf32> -> vector<32x32xf32>
    %265 = vector.extract_strided_slice %1 {offsets = [5, 0], sizes = [1, 32], strides = [1, 1]} : vector<6x32xf32> to vector<1x32xf32>
    %266 = vector.broadcast %265 : vector<1x32xf32> to vector<32x32xf32>
    %267 = arith.addf %264, %266 : vector<32x32xf32>
    %268 = arith.addf %185, %267 : vector<32x32xf32>
    %c1_131 = arith.constant 1 : index
    %c0_132 = arith.constant 0 : index
    %c0_133 = arith.constant 0 : index
    %269 = vector.load %arg3[%c1_131, %c0_132, %c0_133] : memref<3x32x32xf32, #tpu.memory_space<vmem>>, vector<1x32x32xf32>
    %270 = vector.shape_cast %269 : vector<1x32x32xf32> to vector<32x32xf32>
    %cst_134 = arith.constant dense<0.000000e+00> : vector<32x32xf32>
    %271 = tpu.matmul %268, %270, %cst_134 {dimension_numbers = #tpu.dot_dimension_numbers<[1], [0], [0], [1], [0, 0, 1, 1], [], []>} : vector<32x32xf32>, vector<32x32xf32>, vector<32x32xf32> -> vector<32x32xf32>
    %272 = vector.extract_strided_slice %0 {offsets = [1, 0], sizes = [1, 32], strides = [1, 1]} : vector<3x32xf32> to vector<1x32xf32>
    %273 = vector.broadcast %272 : vector<1x32xf32> to vector<32x32xf32>
    %274 = arith.addf %271, %273 : vector<32x32xf32>
    %275 = arith.addf %274, %19 : vector<32x32xf32>
    %cst_135 = arith.constant 0.000000e+00 : f32
    %276 = vector.broadcast %cst_135 : f32 to vector<32x32xf32>
    %277 = arith.maximumf %275, %276 : vector<32x32xf32>
    %cst_136 = arith.constant dense<0.000000e+00> : vector<32xf32>
    %278 = vector.multi_reduction <add>, %277, %cst_136 [1] : vector<32x32xf32> to vector<32xf32>
    %279 = vector.shape_cast %278 : vector<32xf32> to vector<32x1xf32>
    %cst_137 = arith.constant 3.200000e+01 : f32
    %280 = vector.broadcast %cst_137 : f32 to vector<32x1xf32>
    %281 = arith.divf %279, %280 : vector<32x1xf32>
    %282 = vector.broadcast %281 : vector<32x1xf32> to vector<32x32xf32>
    %283 = arith.subf %277, %282 : vector<32x32xf32>
    %284 = vector.broadcast %281 : vector<32x1xf32> to vector<32x32xf32>
    %285 = arith.subf %277, %284 : vector<32x32xf32>
    %286 = arith.mulf %283, %285 : vector<32x32xf32>
    %cst_138 = arith.constant dense<0.000000e+00> : vector<32xf32>
    %287 = vector.multi_reduction <add>, %286, %cst_138 [1] : vector<32x32xf32> to vector<32xf32>
    %288 = vector.shape_cast %287 : vector<32xf32> to vector<32x1xf32>
    %cst_139 = arith.constant 3.200000e+01 : f32
    %289 = vector.broadcast %cst_139 : f32 to vector<32x1xf32>
    %290 = arith.divf %288, %289 : vector<32x1xf32>
    %291 = vector.broadcast %281 : vector<32x1xf32> to vector<32x32xf32>
    %292 = arith.subf %277, %291 : vector<32x32xf32>
    %cst_140 = arith.constant 9.99999974E-6 : f32
    %293 = vector.broadcast %cst_140 : f32 to vector<32x1xf32>
    %294 = arith.addf %290, %293 : vector<32x1xf32>
    %295 = math.rsqrt %294 : vector<32x1xf32>
    %296 = vector.broadcast %295 : vector<32x1xf32> to vector<32x32xf32>
    %297 = arith.mulf %292, %296 : vector<32x32xf32>
    %298 = vector.extract_strided_slice %2 {offsets = [6, 0], sizes = [1, 32], strides = [1, 1]} : vector<7x32xf32> to vector<1x32xf32>
    %299 = vector.broadcast %298 : vector<1x32xf32> to vector<32x32xf32>
    %300 = arith.mulf %297, %299 : vector<32x32xf32>
    %301 = vector.extract_strided_slice %3 {offsets = [6, 0], sizes = [1, 32], strides = [1, 1]} : vector<7x32xf32> to vector<1x32xf32>
    %302 = vector.broadcast %301 : vector<1x32xf32> to vector<32x32xf32>
    %303 = arith.addf %300, %302 : vector<32x32xf32>
    %c2_141 = arith.constant 2 : index
    %c0_142 = arith.constant 0 : index
    %c0_143 = arith.constant 0 : index
    %304 = vector.load %arg3[%c2_141, %c0_142, %c0_143] : memref<3x32x32xf32, #tpu.memory_space<vmem>>, vector<1x32x32xf32>
    %305 = vector.shape_cast %304 : vector<1x32x32xf32> to vector<32x32xf32>
    %cst_144 = arith.constant dense<0.000000e+00> : vector<32x32xf32>
    %306 = tpu.matmul %303, %305, %cst_144 {dimension_numbers = #tpu.dot_dimension_numbers<[1], [0], [0], [1], [0, 0, 1, 1], [], []>} : vector<32x32xf32>, vector<32x32xf32>, vector<32x32xf32> -> vector<32x32xf32>
    %307 = vector.extract_strided_slice %0 {offsets = [2, 0], sizes = [1, 32], strides = [1, 1]} : vector<3x32xf32> to vector<1x32xf32>
    %308 = vector.broadcast %307 : vector<1x32xf32> to vector<32x32xf32>
    %309 = arith.addf %306, %308 : vector<32x32xf32>
    %c0_145 = arith.constant 0 : index
    %c0_146 = arith.constant 0 : index
    %310 = vector.load %arg10[%c0_145, %c0_146] : memref<32x32xf32, #tpu.memory_space<vmem>>, vector<32x32xf32>
    tpu.vector_store %arg10[%c0_145, %c0_146], %309 {strides = array<i32>} : memref<32x32xf32, #tpu.memory_space<vmem>>, vector<32x32xf32>,
    return
  }
  func.func @transform_0(%arg0: i32) -> (i32, i32) {
    %c0_i32 = arith.constant 0 : i32
    %c0_i32_0 = arith.constant 0 : i32
    %c0_i32_1 = arith.constant 0 : i32
    return %c0_i32, %c0_i32_0 : i32, i32
  }
  func.func @transform_1(%arg0: i32) -> (i32, i32) {
    %c0_i32 = arith.constant 0 : i32
    %c0_i32_0 = arith.constant 0 : i32
    %c0_i32_1 = arith.constant 0 : i32
    return %c0_i32, %c0_i32_0 : i32, i32
  }
  func.func @transform_2(%arg0: i32) -> (i32, i32, i32) {
    %c0_i32 = arith.constant 0 : i32
    %c0_i32_0 = arith.constant 0 : i32
    %c0_i32_1 = arith.constant 0 : i32
    %c0_i32_2 = arith.constant 0 : i32
    return %c0_i32, %c0_i32_0, %c0_i32_1 : i32, i32, i32
  }
  func.func @transform_3(%arg0: i32) -> (i32, i32) {
    %c0_i32 = arith.constant 0 : i32
    %c0_i32_0 = arith.constant 0 : i32
    %c0_i32_1 = arith.constant 0 : i32
    return %c0_i32, %c0_i32_0 : i32, i32
  }
  func.func @transform_4(%arg0: i32) -> (i32, i32, i32) {
    %c0_i32 = arith.constant 0 : i32
    %c0_i32_0 = arith.constant 0 : i32
    %c0_i32_1 = arith.constant 0 : i32
    %c0_i32_2 = arith.constant 0 : i32
    return %c0_i32, %c0_i32_0, %c0_i32_1 : i32, i32, i32
  }
  func.func @transform_5(%arg0: i32) -> (i32, i32) {
    %c0_i32 = arith.constant 0 : i32
    %c0_i32_0 = arith.constant 0 : i32
    %c0_i32_1 = arith.constant 0 : i32
    return %c0_i32, %c0_i32_0 : i32, i32
  }
  func.func @transform_6(%arg0: i32) -> (i32, i32) {
    %c0_i32 = arith.constant 0 : i32
    %c0_i32_0 = arith.constant 0 : i32
    %c0_i32_1 = arith.constant 0 : i32
    return %c0_i32, %c0_i32_0 : i32, i32
  }
  func.func @transform_7(%arg0: i32) -> (i32, i32) {
    %c0_i32 = arith.constant 0 : i32
    %c0_i32_0 = arith.constant 0 : i32
    %c0_i32_1 = arith.constant 0 : i32
    return %c0_i32, %c0_i32_0 : i32, i32
  }
  func.func @transform_8(%arg0: i32) -> (i32, i32, i32, i32) {
    %c0_i32 = arith.constant 0 : i32
    %c0_i32_0 = arith.constant 0 : i32
    %c0_i32_1 = arith.constant 0 : i32
    %c0_i32_2 = arith.constant 0 : i32
    %c0_i32_3 = arith.constant 0 : i32
    return %c0_i32, %c0_i32_0, %c0_i32_1, %c0_i32_2 : i32, i32, i32, i32
  }
  func.func @transform_9(%arg0: i32) -> (i32, i32) {
    %c0_i32 = arith.constant 0 : i32
    %c0_i32_0 = arith.constant 0 : i32
    %c0_i32_1 = arith.constant 0 : i32
    return %c0_i32, %c0_i32_0 : i32, i32
  }
}

</mosaic_0001>

<bundles_post_ra>
// kernel: tpu_custom_call.1
= control target key start
LH: loop header
LB: loop body
LE: loop exit
PB: predicated region body
PF: predicated region fallthrough
CT: control target
= control target key end

     0   :  { %v2324_v2 = vmov 0   ;;  %s3396_s0 = inlined_call_operand.vmem [shape: s32[32,1], index: 0, kind: input, shape index: {}]   ;;  %s3397_s1 = inlined_call_operand.vmem [shape: f32[128,32], index: 1, kind: input, shape index: {}]   ;;  %s3398_s2 = inlined_call_operand.vmem [shape: f32[3,32,32], index: 2, kind: input, shape index: {}]   ;;  %s3399_s3 = inlined_call_operand.vmem [shape: f32[3,32], index: 3, kind: input, shape index: {}]   ;;  %s3400_s4 = inlined_call_operand.vmem [shape: f32[6,96,32], index: 4, kind: input, shape index: {}]   ;;  %s3401_s5 = inlined_call_operand.vmem [shape: f32[6,32], index: 5, kind: input, shape index: {}]   ;;  %s3402_s6 = inlined_call_operand.vmem [shape: f32[7,32], index: 6, kind: input, shape index: {}]   ;;  %s3403_s7 = inlined_call_operand.vmem [shape: f32[7,32], index: 7, kind: input, shape index: {}]   ;;  %s3404_s8 = inlined_call_operand.vmem [shape: f32[3,2,32,32], index: 8, kind: input, shape index: {}]   ;;  %s3405_s9 = inlined_call_operand.hbm [shape: f32[32,32], index: 9, kind: output, shape index: {}]  }
   0x1   :  { %v37_v0 = vld [vmem:[%s3396_s0] sm:$0xff]  ;;  %v39_v1 = vld [vmem:[%s3396_s0 + $0x10] sm:$0xff]  ;;  %2232 = vset.pattern.permute.xlu0 %v2324_v2  ;;  %2233 = vset.pattern.permute.xlu1 %v2324_v2  ;;  %v82_v3 = vld [vmem:[%s3397_s1 + $0x78] sm:$0xff] }
   0x2   :  { %44 = vperm.xlu0 %2232, %v37_v0   ;;  %50 = vperm.xlu1 %2233, %v39_v1   ;;  %v81_v4 = vld [vmem:[%s3397_s1 + $0x70] sm:$0xff]  ;;  %v80_v5 = vld [vmem:[%s3397_s1 + $0x68] sm:$0xff]  ;;  %v79_v6 = vld [vmem:[%s3397_s1 + $0x60] sm:$0xff] }
   0x3   :  { %83 = vmatpush.msra.mxu0 %v82_v3 }
   0x5   :  { %84 = vmatpush.msra.mxu0 %v81_v4 }
   0x6   :  { %14 = vsyncpa [#allocation3], 0  ;;  %v38_v7 = vld [vmem:[%s3396_s0 + $0x8] sm:$0xff]  ;;  %v40_v8 = vld [vmem:[%s3396_s0 + $0x18] sm:$0xff]  ;;  %v41_v21 = vlaneseq  ;;  %v2325_v27 = vmov 1.0   ;;  %vm117_vm4 = vcmask 261120  }
   0x7   :  { %85 = vmatpush.msra.mxu0 %v80_v5  ;;  %v78_v9 = vld [vmem:[%s3397_s1 + $0x58] sm:$0xff]  ;;  %v77_v10 = vld [vmem:[%s3397_s1 + $0x50] sm:$0xff]  ;;  %v76_v11 = vld [vmem:[%s3397_s1 + $0x48] sm:$0xff]  ;;  %v2326_v58 = vmov 32.0   ;;  %s2327_s18 = smov 32   ;;  %s2328_s19 = smov 64  }
   0x8   :  { %v75_v12 = vld [vmem:[%s3397_s1 + $0x40] sm:$0xff]  ;;  %v74_v13 = vld [vmem:[%s3397_s1 + $0x38] sm:$0xff]  ;;  %v73_v14 = vld [vmem:[%s3397_s1 + $0x30] sm:$0xff]  ;;  %v42_v25 = vand.u32 127, %v41_v21  ;;  %2234 = vrcp.f32 %v2326_v58  ;;  %s2024_s21 = sshll.u32 %s3405_s9, 4  ;;  %s2330_s22 = smov 128   ;;  %s2025_s21 = int_to_ptr.hbm [resolvable:$true] %s2024_s21 }
   0x9   :  { %86 = vmatpush.msra.mxu0 %v79_v6  ;;  %v72_v15 = vld [vmem:[%s3397_s1 + $0x28] sm:$0xff]  ;;  %v71_v16 = vld [vmem:[%s3397_s1 + $0x20] sm:$0xff]  ;;  %v70_v17 = vld [vmem:[%s3397_s1 + $0x18] sm:$0xff]  ;;  %s2331_s23 = smov 8  }
   0xa   :  { %47 = vperm.xlu0 %2232, %v38_v7   ;;  %53 = vperm.xlu1 %2233, %v40_v8   ;;  %v69_v18 = vld [vmem:[%s3397_s1 + $0x10] sm:$0xff]  ;;  %v68_v19 = vld [vmem:[%s3397_s1 + $0x8] sm:$0xff]  ;;  %v67_v20 = vld [vmem:[%s3397_s1] sm:$0xff] }
   0xb   :  { %87 = vmatpush.msra.mxu0 %v78_v9  ;;  %v115_v22 = vld [vmem:[%s3398_s2 + $0x18] sm:$0xff]  ;;  %v114_v23 = vld [vmem:[%s3398_s2 + $0x10] sm:$0xff]  ;;  %v113_v24 = vld [vmem:[%s3398_s2 + $0x8] sm:$0xff] }
   0xc   :  { %142 = vmatpush.msra.mxu1 %v115_v22  ;;  %2216 = vmatpush.msra.mxu3 %v115_v22  ;;  %v112_v31 = vld [vmem:[%s3398_s2] sm:$0xff] }
   0xd   :  { %88 = vmatpush.msra.mxu0 %v77_v10  ;;  %v33_v36 = vld [vmem:[%s3399_s3] sm:$0x7] }
   0xe   :  { %143 = vmatpush.msra.mxu1 %v114_v23  ;;  %2217 = vmatpush.msra.mxu3 %v114_v23  ;;  %v116_v37 = vperm.slane %v33_v36, 0  ;;  %v2235_v59 = vpop.eup %2234 }
   0xf   :  { %89 = vmatpush.msra.mxu0 %v76_v11  ;;  %v180_v60 = vmul.f32 32.0, %v2235_v59  ;;  %vm184_vm5 = vweird.f32 %v2235_v59 }
  0x10   :  { %144 = vmatpush.msra.mxu1 %v113_v24  ;;  %2218 = vmatpush.msra.mxu3 %v113_v24 }
  0x11   :  { %90 = vmatpush.msra.mxu0 %v75_v12  ;;  %v181_v61 = vsub.f32 1.0, %v180_v60 }
  0x12   :  { %145 = vmatpush.msra.mxu1 %v112_v31  ;;  %2219 = vmatpush.msra.mxu3 %v112_v31  ;;  %v2508_v31 = vld [vmem:[%s3403_s7] sm:$0x7f] }
  0x13   :  { %91 = vmatpush.msra.mxu0 %v74_v13  ;;  %v182_v62 = vmul.f32 %v2235_v59, %v181_v61 }
  0x15   :  { %92 = vmatpush.msra.mxu0 %v73_v14  ;;  %v183_v63 = vadd.f32 %v2235_v59, %v182_v62 }
  0x17   :  { %93 = vmatpush.msra.mxu0 %v72_v15  ;;  %v2477_v0 = vsel %vm184_vm5, %v2235_v59, %v183_v63 }
  0x19   :  { %94 = vmatpush.msra.mxu0 %v71_v16 }
  0x1b   :  { %95 = vmatpush.msra.mxu0 %v70_v17 }
  0x1d   :  { %96 = vmatpush.msra.mxu0 %v69_v18 }
  0x1f   :  { %97 = vmatpush.msra.mxu0 %v68_v19 }
  0x21   :  { %98 = vmatpush.msra.mxu0 %v67_v20 }
  0x74   :  { %v45_v26 = vpop.permute.xlu0 %44  ;;  %v51_v29 = vpop.permute.xlu1 %50 }
  0x75   :  { %vm55_vm0 = vcmp.eq.s32.totalorder %v42_v25, %v45_v26  ;;  %vm57_vm2 = vcmp.eq.s32.totalorder %v42_v25, %v51_v29  ;;  %v2503_v29 = vld [vmem:[%s3402_s6] sm:$0x7f] }
  0x76   :  { %2040 = vmatmul.msk.f32.vlgmr.msra.gmra.mxu0 %vm55_vm0, %v2325_v27 }
  0x7c   :  { %v48_v28 = vpop.permute.xlu0 %47  ;;  %v54_v30 = vpop.permute.xlu1 %53 }
  0x7d   :  { %vm56_vm1 = vcmp.eq.s32.totalorder %v42_v25, %v48_v28  ;;  %vm58_vm3 = vcmp.eq.s32.totalorder %v42_v25, %v54_v30 }
  0x7e   :  { %2041 = vmatmul.msk.f32.gmra.mxu0 %vm56_vm1, %v2325_v27 }
  0x86   :  { %2042 = vmatmul.msk.f32.gmra.mxu0 %vm57_vm2, %v2325_v27  ;;  %vm417_vm2 = vcmask 785408  }
  0x8e   :  { %2043 = vmatmul.msk.f32.gmra.mxu0 %vm58_vm3, %v2325_v27  ;;  %vm399_vm3 = vcmask 523264  }
  0xf3   :  { %v100_v32 = vpop.f32.mrf.mxu0 }
  0xf4   :  { %2044 = vmatmul.msk.f32.vlgmr.msra.gmra.mxu1 %vm117_vm4, %v100_v32  ;;  %v2511_v32 = vperm.slane %v2503_v29, 0 }
  0xfb   :  { %v103_v33 = vpop.f32.mrf.mxu0 }
  0xfc   :  { %2045 = vmatmul.msk.f32.gmra.mxu1 %vm117_vm4, %v103_v33 }
 0x103   :  { %v106_v34 = vpop.f32.mrf.mxu0 }
 0x104   :  { %2046 = vmatmul.msk.f32.gmra.mxu1 %vm117_vm4, %v106_v34 }
 0x10b   :  { %v109_v35 = vpop.f32.mrf.mxu0 }
 0x10c   :  { %2047 = vmatmul.msk.f32.vlgmr.msra.gmra.mxu3 %vm117_vm4, %v109_v35  ;;  %v267_v35 = vperm.slane %v2508_v31, 0 }
 0x171   :  { %v147_v38 = vpop.f32.mrf.mxu1 }
 0x172   :  { %v148_v39 = vadd.f32 %v147_v38, %v116_v37 }
 0x174   :  { %v2461_v40 = vmax.f32 %v148_v39, 0.0 }
 0x176   :  { %v163_v41 = vmax.f32 %v2461_v40, 0.0 }
 0x178   :  { %v167_v42 = vsel %vm117_vm4, %v163_v41, 0.0 }
 0x179   :  { %v150_v43 = vpop.f32.mrf.mxu1  ;;  %168 = vadd.xlane.f32.xlu1 %v167_v42 }
 0x17a   :  { %v151_v44 = vadd.f32 %v150_v43, %v116_v37 }
 0x17c   :  { %v2465_v45 = vmax.f32 %v151_v44, 0.0 }
 0x17e   :  { %v164_v46 = vmax.f32 %v2465_v45, 0.0 }
 0x180   :  { %v170_v47 = vsel %vm117_vm4, %v164_v46, 0.0 }
 0x181   :  { %171 = vadd.xlane.f32.xlu0 %v170_v47  ;;  %v153_v48 = vpop.f32.mrf.mxu1 }
 0x182   :  { %v154_v51 = vadd.f32 %v153_v48, %v116_v37 }
 0x184   :  { %v2472_v54 = vmax.f32 %v154_v51, 0.0 }
 0x186   :  { %v165_v56 = vmax.f32 %v2472_v54, 0.0 }
 0x188   :  { %v173_v57 = vsel %vm117_vm4, %v165_v56, 0.0 }
 0x18f   :  { %v156_v49 = vpop.f32.mrf.mxu3 }
 0x190   :  { %v157_v50 = vadd.f32 %v156_v49, %v116_v37 }
 0x192   :  { %v2469_v52 = vmax.f32 %v157_v50, 0.0 }
 0x194   :  { %v166_v53 = vmax.f32 %v2469_v52, 0.0 }
 0x196   :  { %v176_v55 = vsel %vm117_vm4, %v166_v53, 0.0 }
 0x197   :  { %177 = vadd.xlane.f32.xlu2 %v176_v55 }
 0x19f   :  { %174 = vadd.xlane.f32.xlu2 %v173_v57 }
 0x1ec   :  { %v169_v14 = vpop.xlane.xlu1 %168 }
 0x1ed   :  { %v186_v15 = vmul.f32 %v2477_v0, %v169_v14 }
 0x1ef   :  { %v2493_v17 = vsub.f32 %v163_v41, %v186_v15 }
 0x1f1   :  { %v194_v19 = vmul.f32 %v2493_v17, %v2493_v17 }
 0x1f3   :  { %v198_v20 = vsel %vm117_vm4, %v194_v19, 0.0  ;;  %v2534_v19 = vld [vmem:[%s3404_s8] sm:$0xff] }
 0x1f4   :  { %v172_v1 = vpop.xlane.xlu0 %171 }
 0x1f5   :  { %v187_v2 = vmul.f32 %v2477_v0, %v172_v1 }
 0x1f7   :  { %v191_v3 = vsub.f32 %v164_v46, %v187_v2 }
 0x1f9   :  { %v195_v4 = vmul.f32 %v191_v3, %v191_v3 }
 0x1fb   :  { %v201_v5 = vsel %vm117_vm4, %v195_v4, 0.0 }
 0x1fc   :  { %202 = vadd.xlane.f32.xlu2 %v201_v5 }
 0x20a   :  { %v178_v6 = vpop.xlane.xlu2 %177 }
 0x20b   :  { %v189_v9 = vmul.f32 %v2477_v0, %v178_v6 }
 0x20d   :  { %v2487_v12 = vsub.f32 %v166_v53, %v189_v9 }
 0x20f   :  { %v197_v16 = vmul.f32 %v2487_v12, %v2487_v12 }
 0x211   :  { %v207_v18 = vsel %vm117_vm4, %v197_v16, 0.0 }
 0x212   :  { %v175_v7 = vpop.xlane.xlu2 %174 }
 0x213   :  { %v188_v8 = vmul.f32 %v2477_v0, %v175_v7 }
 0x215   :  { %v2483_v10 = vsub.f32 %v165_v56, %v188_v8 }
 0x217   :  { %v196_v11 = vmul.f32 %v2483_v10, %v2483_v10 }
 0x219   :  { %v204_v13 = vsel %vm117_vm4, %v196_v11, 0.0 }
 0x21a   :  { %205 = vadd.xlane.f32.xlu2 %v204_v13 }
 0x222   :  { %208 = vadd.xlane.f32.xlu2 %v207_v18 }
 0x22a   :  { %199 = vadd.xlane.f32.xlu2 %v198_v20  ;;  %v2539_v20 = vld [vmem:[%s3404_s8 + $0x18] sm:$0xff] }
 0x26f   :  { %v203_v21 = vpop.xlane.xlu2 %202 }
 0x270   :  { %v211_v22 = vmul.f32 %v203_v21, %v2477_v0  ;;  %v2555_v21 = vld [vmem:[%s3404_s8 + $0x20] sm:$0xff] }
 0x272   :  { %v215_v23 = vadd.f32 1e-05, %v211_v22  ;;  %v2564_v22 = vld [vmem:[%s3404_s8 + $0x28] sm:$0xff] }
 0x274   :  { %2236 = vrsqrt.f32 %v215_v23  ;;  %vm234_vm7 = vweird.f32 %v215_v23 }
 0x27a   :  { %v2237_v24 = vpop.eup %2236 }
 0x27b   :  { %v229_v25 = vmul.f32 %v2237_v24, %v215_v23  ;;  %vm235_vm6 = vweird.f32 %v2237_v24  ;;  %v2571_v23 = vld [vmem:[%s3404_s8 + $0x30] sm:$0xff] }
 0x27c   :  { %vm236_vm8 = vmor %vm234_vm7, %vm235_vm6 }
 0x27d   :  { %v230_v26 = vmul.f32 %v2237_v24, %v229_v25  ;;  %v2585_v25 = vld [vmem:[%s3404_s8 + $0x10] sm:$0xff] }
 0x27f   :  { %v231_v27 = vmul.f32 0.5, %v230_v26 }
 0x281   :  { %v232_v28 = vsub.f32 1.5, %v231_v27  ;;  %v415_v27 = vld [vmem:[%s3400_s4 + $0x58] sm:$0xff] }
 0x282   :  { %434 = vmatpush.msrb.mxu1 %v415_v27 }
 0x283   :  { %v233_v30 = vmul.f32 %v2237_v24, %v232_v28  ;;  %v414_v28 = vld [vmem:[%s3400_s4 + $0x50] sm:$0xff] }
 0x284   :  { %435 = vmatpush.msrb.mxu1 %v414_v28 }
 0x285   :  { %v237_v33 = vsel %vm236_vm8, %v2237_v24, %v233_v30  ;;  %v2578_v24 = vld [vmem:[%s3404_s8 + $0x38] sm:$0xff]  ;;  %v413_v30 = vld [vmem:[%s3400_s4 + $0x48] sm:$0xff] }
 0x286   :  { %v259_v34 = vmul.f32 %v237_v33, %v191_v3  ;;  %436 = vmatpush.msrb.mxu1 %v413_v30 }
 0x288   :  { %v264_v36 = vmul.f32 %v2511_v32, %v259_v34 }
 0x28a   :  { %v2515_v37 = vadd.f32 %v267_v35, %v264_v36  ;;  %v412_v36 = vld [vmem:[%s3400_s4 + $0x40] sm:$0xff] }
 0x28b   :  { %437 = vmatpush.msrb.mxu1 %v412_v36 }
 0x28c   :  { %369 = vrot.lane.b32.xlu1 %v2515_v37, %s2327_s18 }
 0x28d   :  { %v206_v38 = vpop.xlane.xlu2 %205 }
 0x28e   :  { %v212_v39 = vmul.f32 %v206_v38, %v2477_v0  ;;  %v410_v38 = vld [vmem:[%s3400_s4 + $0x30] sm:$0xff] }
 0x290   :  { %v216_v41 = vadd.f32 1e-05, %v212_v39  ;;  %v409_v39 = vld [vmem:[%s3400_s4 + $0x28] sm:$0xff] }
 0x292   :  { %2238 = vrsqrt.f32 %v216_v41  ;;  %vm244_vm10 = vweird.f32 %v216_v41 }
 0x295   :  { %v209_v42 = vpop.xlane.xlu2 %208 }
 0x296   :  { %v213_v43 = vmul.f32 %v209_v42, %v2477_v0  ;;  %v407_v42 = vld [vmem:[%s3400_s4 + $0x18] sm:$0xff] }
 0x298   :  { %v2239_v44 = vpop.eup %2238  ;;  %v217_v46 = vadd.f32 1e-05, %v213_v43  ;;  %v406_v43 = vld [vmem:[%s3400_s4 + $0x10] sm:$0xff] }
 0x299   :  { %v239_v47 = vmul.f32 %v2239_v44, %v216_v41  ;;  %vm245_vm9 = vweird.f32 %v2239_v44  ;;  %v408_v41 = vld [vmem:[%s3400_s4 + $0x20] sm:$0xff] }
 0x29a   :  { %2240 = vrsqrt.f32 %v217_v46  ;;  %vm246_vm11 = vmor %vm244_vm10, %vm245_vm9  ;;  %vm254_vm13 = vweird.f32 %v217_v46 }
 0x29b   :  { %v240_v48 = vmul.f32 %v2239_v44, %v239_v47 }
 0x29d   :  { %v241_v49 = vmul.f32 0.5, %v240_v48  ;;  %v200_v50 = vpop.xlane.xlu2 %199 }
 0x29e   :  { %v210_v51 = vmul.f32 %v200_v50, %v2477_v0 }
 0x29f   :  { %v242_v53 = vsub.f32 1.5, %v241_v49 }
 0x2a0   :  { %v2241_v55 = vpop.eup %2240  ;;  %v214_v56 = vadd.f32 1e-05, %v210_v51 }
 0x2a1   :  { %v249_v57 = vmul.f32 %v2241_v55, %v217_v46  ;;  %v243_v58 = vmul.f32 %v2239_v44, %v242_v53  ;;  %vm255_vm12 = vweird.f32 %v2241_v55  ;;  %v404_v46 = vld [vmem:[%s3400_s4] sm:$0xff] }
 0x2a2   :  { %2242 = vrsqrt.f32 %v214_v56  ;;  %vm256_vm14 = vmor %vm254_vm13, %vm255_vm12  ;;  %vm224_vm0 = vweird.f32 %v214_v56 }
 0x2a3   :  { %v250_v59 = vmul.f32 %v2241_v55, %v249_v57  ;;  %v247_v61 = vsel %vm246_vm11, %v2239_v44, %v243_v58  ;;  %v405_v44 = vld [vmem:[%s3400_s4 + $0x8] sm:$0xff] }
 0x2a4   :  { %v260_v3 = vmul.f32 %v247_v61, %v2483_v10 }
 0x2a5   :  { %v251_v60 = vmul.f32 0.5, %v250_v59 }
 0x2a6   :  { %v265_v9 = vmul.f32 %v2511_v32, %v260_v3 }
 0x2a7   :  { %v252_v62 = vsub.f32 1.5, %v251_v60 }
 0x2a8   :  { %v2243_v63 = vpop.eup %2242  ;;  %v270_v15 = vadd.f32 %v267_v35, %v265_v9 }
 0x2a9   :  { %v253_v1 = vmul.f32 %v2241_v55, %v252_v62  ;;  %v219_v2 = vmul.f32 %v2243_v63, %v214_v56  ;;  %vm225_vm15 = vweird.f32 %v2243_v63 }
 0x2aa   :  { %vm226_vm1 = vmor %vm224_vm0, %vm225_vm15 }
 0x2ab   :  { %v257_v4 = vsel %vm256_vm14, %v2241_v55, %v253_v1  ;;  %v220_v5 = vmul.f32 %v2243_v63, %v219_v2 }
 0x2ac   :  { %v261_v6 = vmul.f32 %v257_v4, %v2487_v12 }
 0x2ad   :  { %v221_v7 = vmul.f32 0.5, %v220_v5 }
 0x2ae   :  { %v266_v8 = vmul.f32 %v2511_v32, %v261_v6  ;;  %v2645_v6 = vld [vmem:[%s3401_s5] sm:$0x3f] }
 0x2af   :  { %v222_v11 = vsub.f32 1.5, %v221_v7  ;;  %v416_v7 = vperm.slane %v2645_v6, 0 }
 0x2b0   :  { %v271_v13 = vadd.f32 %v267_v35, %v266_v8 }
 0x2b1   :  { %v223_v14 = vmul.f32 %v2243_v63, %v222_v11 }
 0x2b2   :  { %300 = vmatpush.msra.mxu2 %v271_v13  ;;  %2220 = vmatpush.msrb.mxu3 %v271_v13 }
 0x2b3   :  { %v227_v10 = vsel %vm226_vm1, %v2243_v63, %v223_v14  ;;  %373 = vrot.lane.b32.xlu1 %v271_v13, %s2327_s18 }
 0x2b4   :  { %v258_v16 = vmul.f32 %v227_v10, %v2493_v17  ;;  %301 = vmatpush.msra.mxu2 %v270_v15  ;;  %2221 = vmatpush.msrb.mxu3 %v270_v15  ;;  %v2549_v17 = vld [vmem:[%s3404_s8 + $0x8] sm:$0xff] }
 0x2b6   :  { %302 = vmatpush.msra.mxu2 %v2515_v37  ;;  %2222 = vmatpush.msrb.mxu3 %v2515_v37  ;;  %v263_v12 = vmul.f32 %v2511_v32, %v258_v16 }
 0x2b8   :  { %v268_v18 = vadd.f32 %v267_v35, %v263_v12 }
 0x2ba   :  { %367 = vrot.lane.b32.xlu2 %v268_v18, %s2327_s18  ;;  %303 = vmatpush.msra.mxu2 %v268_v18 }
 0x2bb   :  { %2223 = vmatpush.msrb.mxu3 %v268_v18  ;;  %2048 = vmatmul.msk.f32.vlgmr.msra.gmra.mxu2 %vm117_vm4, %v2534_v19 }
 0x2bc   :  { %2051 = vmatmul.msk.f32.vlgmr.msrb.gmra.mxu3 %vm117_vm4, %v2539_v20 }
 0x2bd   :  { %346 = vmatpush.msra.mxu3 %v271_v13 }
 0x2bf   :  { %347 = vmatpush.msra.mxu3 %v270_v15 }
 0x2c1   :  { %348 = vmatpush.msra.mxu3 %v2515_v37  ;;  %v411_v37 = vld [vmem:[%s3400_s4 + $0x38] sm:$0xff] }
 0x2c2   :  { %438 = vmatpush.msrb.mxu1 %v411_v37 }
 0x2c3   :  { %349 = vmatpush.msra.mxu3 %v268_v18  ;;  %2049 = vmatmul.msk.f32.gmra.mxu2 %vm117_vm4, %v2549_v17 }
 0x2c4   :  { %2056 = vmatmul.msk.f32.vlgmr.msra.gmra.mxu3 %vm117_vm4, %v2555_v21  ;;  %439 = vmatpush.msrb.mxu1 %v410_v38 }
 0x2c6   :  { %440 = vmatpush.msrb.mxu1 %v409_v39 }
 0x2c8   :  { %441 = vmatpush.msrb.mxu1 %v408_v41 }
 0x2ca   :  { %442 = vmatpush.msrb.mxu1 %v407_v42 }
 0x2cb   :  { %2050 = vmatmul.msk.f32.gmra.mxu2 %vm117_vm4, %v2585_v25 }
 0x2cc   :  { %2057 = vmatmul.msk.f32.gmra.mxu3 %vm117_vm4, %v2564_v22  ;;  %443 = vmatpush.msrb.mxu1 %v406_v43 }
 0x2ce   :  { %444 = vmatpush.msrb.mxu1 %v405_v44 }
 0x2d0   :  { %445 = vmatpush.msrb.mxu1 %v404_v46 }
 0x2d4   :  { %2058 = vmatmul.msk.f32.gmra.mxu3 %vm117_vm4, %v2571_v23 }
 0x2dc   :  { %2059 = vmatmul.msk.f32.gmra.mxu3 %vm117_vm4, %v2578_v24 }
 0x2fe   :  { %v370_v56 = vpop.permute.xlu1 %369 }
 0x314   :  { %v368_v48 = vpop.permute.xlu2 %367 }
 0x325   :  { %v374_v1 = vpop.permute.xlu1 %373 }
 0x33e   :  { %v305_v47 = vpop.f32.mrf.mxu2 }
 0x33f   :  { %v314_v26 = vpop.f32.mrf.mxu3  ;;  %v395_v49 = vsel %vm117_vm4, %v305_v47, %v368_v48 }
 0x340   :  { %v398_v2 = vsel %vm117_vm4, %v314_v26, %v374_v1 }
 0x346   :  { %v308_v53 = vpop.f32.mrf.mxu2 }
 0x347   :  { %v351_v32 = vpop.f32.mrf.mxu3  ;;  %v396_v57 = vsel %vm117_vm4, %v308_v53, %v370_v56 }
 0x348   :  { %383 = vrot.lane.b32.xlu0 %v351_v32, %s2328_s19 }
 0x34e   :  { %v311_v60 = vpop.f32.mrf.mxu2 }
 0x34f   :  { %v354_v33 = vpop.f32.mrf.mxu3 }
 0x350   :  { %371 = vrot.lane.b32.xlu0 %v270_v15, %s2327_s18  ;;  %385 = vrot.lane.b32.xlu2 %v354_v33, %s2328_s19 }
 0x357   :  { %v357_v34 = vpop.f32.mrf.mxu3 }
 0x358   :  { %387 = vrot.lane.b32.xlu2 %v357_v34, %s2328_s19 }
 0x35f   :  { %v360_v35 = vpop.f32.mrf.mxu3 }
 0x360   :  { %389 = vrot.lane.b32.xlu0 %v360_v35, %s2328_s19 }
 0x3aa   :  { %v386_v55 = vpop.permute.xlu2 %385 }
 0x3ab   :  { %v401_v58 = vsel %vm399_vm3, %v396_v57, %v386_v55 }
 0x3b2   :  { %v388_v62 = vpop.permute.xlu2 %387 }
 0x3ba   :  { %v384_v50 = vpop.permute.xlu0 %383 }
 0x3bb   :  { %v400_v51 = vsel %vm399_vm3, %v395_v49, %v384_v50 }
 0x3bc   :  { %2060 = vmatmul.msk.f32.vlgmr.msrb.gmra.mxu1 %vm417_vm2, %v400_v51 }
 0x3c2   :  { %v372_v59 = vpop.permute.xlu0 %371 }
 0x3c3   :  { %v397_v61 = vsel %vm117_vm4, %v311_v60, %v372_v59 }
 0x3c4   :  { %2061 = vmatmul.msk.f32.gmra.mxu1 %vm417_vm2, %v401_v58  ;;  %v402_v63 = vsel %vm399_vm3, %v397_v61, %v388_v62 }
 0x3cc   :  { %2062 = vmatmul.msk.f32.gmra.mxu1 %vm417_vm2, %v402_v63 }
 0x3d2   :  { %v390_v3 = vpop.permute.xlu0 %389 }
 0x3d3   :  { %v403_v4 = vsel %vm399_vm3, %v398_v2, %v390_v3 }
 0x3d4   :  { %2063 = vmatmul.msk.f32.gmra.mxu1 %vm417_vm2, %v403_v4 }
 0x439   :  { %v447_v5 = vpop.f32.mrf.mxu1 }
 0x43a   :  { %v448_v27 = vadd.f32 %v447_v5, %v416_v7 }
 0x43c   :  { %v459_v30 = vmax.f32 %v448_v27, 0.0 }
 0x43e   :  { %v463_v32 = vsel %vm117_vm4, %v459_v30, 0.0 }
 0x441   :  { %v450_v8 = vpop.f32.mrf.mxu1 }
 0x442   :  { %v451_v9 = vadd.f32 %v450_v8, %v416_v7 }
 0x444   :  { %v460_v11 = vmax.f32 %v451_v9, 0.0 }
 0x446   :  { %v466_v13 = vsel %vm117_vm4, %v460_v11, 0.0 }
 0x447   :  { %467 = vadd.xlane.f32.xlu0 %v466_v13 }
 0x449   :  { %v453_v14 = vpop.f32.mrf.mxu1 }
 0x44a   :  { %v454_v15 = vadd.f32 %v453_v14, %v416_v7  ;;  %v551_v14 = vperm.slane %v2503_v29, 1 }
 0x44c   :  { %v461_v10 = vmax.f32 %v454_v15, 0.0 }
 0x44e   :  { %v469_v16 = vsel %vm117_vm4, %v461_v10, 0.0 }
 0x44f   :  { %470 = vadd.xlane.f32.xlu1 %v469_v16 }
 0x451   :  { %v456_v12 = vpop.f32.mrf.mxu1 }
 0x452   :  { %v457_v18 = vadd.f32 %v456_v12, %v416_v7  ;;  %v556_v12 = vperm.slane %v2508_v31, 1 }
 0x454   :  { %v462_v26 = vmax.f32 %v457_v18, 0.0 }
 0x456   :  { %v472_v28 = vsel %vm117_vm4, %v462_v26, 0.0 }
 0x457   :  { %473 = vadd.xlane.f32.xlu2 %v472_v28 }
 0x45f   :  { %464 = vadd.xlane.f32.xlu2 %v463_v32 }
 0x4ba   :  { %v468_v33 = vpop.xlane.xlu0 %467 }
 0x4bb   :  { %v476_v34 = vmul.f32 %v468_v33, %v2477_v0 }
 0x4bd   :  { %v480_v35 = vsub.f32 %v460_v11, %v476_v34 }
 0x4bf   :  { %v484_v36 = vmul.f32 %v480_v35, %v480_v35 }
 0x4c1   :  { %v490_v37 = vsel %vm117_vm4, %v484_v36, 0.0 }
 0x4c2   :  { %491 = vadd.xlane.f32.xlu2 %v490_v37  ;;  %v471_v38 = vpop.xlane.xlu1 %470 }
 0x4c3   :  { %v477_v39 = vmul.f32 %v471_v38, %v2477_v0 }
 0x4c5   :  { %v2655_v41 = vsub.f32 %v461_v10, %v477_v39 }
 0x4c7   :  { %v485_v42 = vmul.f32 %v2655_v41, %v2655_v41 }
 0x4c9   :  { %v493_v43 = vsel %vm117_vm4, %v485_v42, 0.0 }
 0x4ca   :  { %v474_v44 = vpop.xlane.xlu2 %473  ;;  %494 = vadd.xlane.f32.xlu0 %v493_v43 }
 0x4cb   :  { %v478_v46 = vmul.f32 %v474_v44, %v2477_v0 }
 0x4cd   :  { %v2661_v47 = vsub.f32 %v462_v26, %v478_v46 }
 0x4cf   :  { %v486_v48 = vmul.f32 %v2661_v47, %v2661_v47 }
 0x4d1   :  { %v496_v49 = vsel %vm117_vm4, %v486_v48, 0.0 }
 0x4d2   :  { %497 = vadd.xlane.f32.xlu1 %v496_v49  ;;  %v465_v50 = vpop.xlane.xlu2 %464 }
 0x4d3   :  { %v475_v51 = vmul.f32 %v465_v50, %v2477_v0 }
 0x4d5   :  { %v2667_v53 = vsub.f32 %v459_v30, %v475_v51 }
 0x4d7   :  { %v483_v55 = vmul.f32 %v2667_v53, %v2667_v53 }
 0x4d9   :  { %v487_v56 = vsel %vm117_vm4, %v483_v55, 0.0 }
 0x4da   :  { %488 = vadd.xlane.f32.xlu1 %v487_v56 }
 0x535   :  { %v492_v57 = vpop.xlane.xlu2 %491 }
 0x536   :  { %v500_v58 = vmul.f32 %v492_v57, %v2477_v0 }
 0x538   :  { %v504_v59 = vadd.f32 1e-05, %v500_v58 }
 0x53a   :  { %2244 = vrsqrt.f32 %v504_v59  ;;  %vm523_vm6 = vweird.f32 %v504_v59 }
 0x53d   :  { %v495_v60 = vpop.xlane.xlu0 %494 }
 0x53e   :  { %v501_v61 = vmul.f32 %v495_v60, %v2477_v0 }
 0x540   :  { %v2245_v62 = vpop.eup %2244  ;;  %v505_v63 = vadd.f32 1e-05, %v501_v61 }
 0x541   :  { %v518_v1 = vmul.f32 %v2245_v62, %v504_v59  ;;  %vm524_vm5 = vweird.f32 %v2245_v62 }
 0x542   :  { %2246 = vrsqrt.f32 %v505_v63  ;;  %vm525_vm7 = vmor %vm523_vm6, %vm524_vm5  ;;  %vm533_vm9 = vweird.f32 %v505_v63 }
 0x543   :  { %v519_v2 = vmul.f32 %v2245_v62, %v518_v1  ;;  %v2075_v1 = vld [vmem:[%s3400_s4 + $0x78] sm:$0xff] }
 0x545   :  { %v520_v3 = vmul.f32 0.5, %v519_v2  ;;  %v498_v4 = vpop.xlane.xlu1 %497 }
 0x546   :  { %v502_v5 = vmul.f32 %v498_v4, %v2477_v0  ;;  %v2073_v4 = vld [vmem:[%s3400_s4 + $0x68] sm:$0xff] }
 0x547   :  { %v521_v7 = vsub.f32 1.5, %v520_v3  ;;  %v2074_v3 = vld [vmem:[%s3400_s4 + $0x70] sm:$0xff] }
 0x548   :  { %v2247_v8 = vpop.eup %2246  ;;  %v506_v9 = vadd.f32 1e-05, %v502_v5 }
 0x549   :  { %v522_v11 = vmul.f32 %v2245_v62, %v521_v7  ;;  %v528_v13 = vmul.f32 %v2247_v8, %v505_v63  ;;  %vm534_vm8 = vweird.f32 %v2247_v8 }
 0x54a   :  { %2248 = vrsqrt.f32 %v506_v9  ;;  %vm535_vm10 = vmor %vm533_vm9, %vm534_vm8  ;;  %vm543_vm12 = vweird.f32 %v506_v9 }
 0x54b   :  { %v526_v15 = vsel %vm525_vm7, %v2245_v62, %v522_v11  ;;  %v529_v10 = vmul.f32 %v2247_v8, %v528_v13 }
 0x54c   :  { %v548_v16 = vmul.f32 %v526_v15, %v480_v35 }
 0x54d   :  { %v530_v18 = vmul.f32 0.5, %v529_v10  ;;  %v489_v26 = vpop.xlane.xlu1 %488 }
 0x54e   :  { %v499_v27 = vmul.f32 %v489_v26, %v2477_v0  ;;  %v553_v28 = vmul.f32 %v551_v14, %v548_v16 }
 0x54f   :  { %v531_v30 = vsub.f32 1.5, %v530_v18 }
 0x550   :  { %v2249_v32 = vpop.eup %2248  ;;  %v503_v33 = vadd.f32 1e-05, %v499_v27  ;;  %v558_v34 = vadd.f32 %v556_v12, %v553_v28 }
 0x551   :  { %v538_v36 = vmul.f32 %v2249_v32, %v506_v9  ;;  %v532_v37 = vmul.f32 %v2247_v8, %v531_v30  ;;  %vm544_vm11 = vweird.f32 %v2249_v32 }
 0x552   :  { %2250 = vrsqrt.f32 %v503_v33  ;;  %625 = vrot.lane.b32.xlu1 %v558_v34, %s2327_s18  ;;  %vm545_vm13 = vmor %vm543_vm12, %vm544_vm11  ;;  %vm513_vm15 = vweird.f32 %v503_v33 }
 0x553   :  { %v539_v38 = vmul.f32 %v2249_v32, %v538_v36  ;;  %v536_v39 = vsel %vm535_vm10, %v2247_v8, %v532_v37  ;;  %v2072_v8 = vld [vmem:[%s3400_s4 + $0x60] sm:$0xff] }
 0x554   :  { %v549_v48 = vmul.f32 %v536_v39, %v2655_v41 }
 0x555   :  { %v540_v35 = vmul.f32 0.5, %v539_v38 }
 0x556   :  { %v554_v57 = vmul.f32 %v551_v14, %v549_v48 }
 0x557   :  { %v541_v42 = vsub.f32 1.5, %v540_v35 }
 0x558   :  { %v2251_v43 = vpop.eup %2250  ;;  %v559_v61 = vadd.f32 %v556_v12, %v554_v57 }
 0x559   :  { %v542_v44 = vmul.f32 %v2249_v32, %v541_v42  ;;  %v508_v46 = vmul.f32 %v2251_v43, %v503_v33  ;;  %vm514_vm14 = vweird.f32 %v2251_v43  ;;  %v672_v42 = vperm.slane %v2645_v6, 1 }
 0x55a   :  { %vm515_vm0 = vmor %vm513_vm15, %vm514_vm14 }
 0x55b   :  { %v546_v49 = vsel %vm545_vm13, %v2249_v32, %v542_v44  ;;  %v509_v50 = vmul.f32 %v2251_v43, %v508_v46 }
 0x55c   :  { %v550_v51 = vmul.f32 %v546_v49, %v2661_v47 }
 0x55d   :  { %v510_v55 = vmul.f32 0.5, %v509_v50 }
 0x55e   :  { %v555_v56 = vmul.f32 %v551_v14, %v550_v51 }
 0x55f   :  { %v511_v58 = vsub.f32 1.5, %v510_v55 }
 0x560   :  { %v560_v59 = vadd.f32 %v556_v12, %v555_v56 }
 0x561   :  { %v512_v60 = vmul.f32 %v2251_v43, %v511_v58 }
 0x562   :  { %629 = vrot.lane.b32.xlu1 %v560_v59, %s2327_s18  ;;  %573 = vmatpush.msrb.mxu2 %v560_v59 }
 0x563   :  { %v516_v62 = vsel %vm515_vm0, %v2251_v43, %v512_v60  ;;  %602 = vmatpush.msrb.mxu3 %v560_v59 }
 0x564   :  { %574 = vmatpush.msrb.mxu2 %v559_v61  ;;  %v547_v41 = vmul.f32 %v516_v62, %v2667_v53  ;;  %v2076_v53 = vld [vmem:[%s3400_s4 + $0x80] sm:$0xff] }
 0x565   :  { %603 = vmatpush.msrb.mxu3 %v559_v61 }
 0x566   :  { %575 = vmatpush.msrb.mxu2 %v558_v34  ;;  %v552_v47 = vmul.f32 %v551_v14, %v547_v41 }
 0x567   :  { %604 = vmatpush.msrb.mxu3 %v558_v34 }
 0x568   :  { %v557_v63 = vadd.f32 %v556_v12, %v552_v47 }
 0x56a   :  { %623 = vrot.lane.b32.xlu0 %v557_v63, %s2327_s18  ;;  %576 = vmatpush.msrb.mxu2 %v557_v63 }
 0x56b   :  { %605 = vmatpush.msrb.mxu3 %v557_v63  ;;  %2064 = vmatmul.msk.f32.vlgmr.msrb.gmra.mxu2 %vm117_vm4, %v2534_v19  ;;  %v2083_v19 = vld [vmem:[%s3400_s4 + $0xb8] sm:$0xff] }
 0x56c   :  { %2068 = vmatmul.msk.f32.vlgmr.msrb.gmra.mxu3 %vm117_vm4, %v2555_v21  ;;  %689 = vmatpush.msrb.mxu0 %v2083_v19  ;;  %v2081_v21 = vld [vmem:[%s3400_s4 + $0xa8] sm:$0xff] }
 0x573   :  { %2065 = vmatmul.msk.f32.gmra.mxu2 %vm117_vm4, %v2549_v17  ;;  %v2082_v17 = vld [vmem:[%s3400_s4 + $0xb0] sm:$0xff] }
 0x574   :  { %2069 = vmatmul.msk.f32.gmra.mxu3 %vm117_vm4, %v2564_v22  ;;  %690 = vmatpush.msrb.mxu0 %v2082_v17  ;;  %v2079_v22 = vld [vmem:[%s3400_s4 + $0x98] sm:$0xff] }
 0x576   :  { %691 = vmatpush.msrb.mxu0 %v2081_v21 }
 0x57b   :  { %2066 = vmatmul.msk.f32.gmra.mxu2 %vm117_vm4, %v2585_v25  ;;  %v2077_v25 = vld [vmem:[%s3400_s4 + $0x88] sm:$0xff] }
 0x57c   :  { %2070 = vmatmul.msk.f32.gmra.mxu3 %vm117_vm4, %v2571_v23 }
 0x583   :  { %2067 = vmatmul.msk.f32.gmra.mxu2 %vm117_vm4, %v2539_v20  ;;  %v2080_v20 = vld [vmem:[%s3400_s4 + $0xa0] sm:$0xff] }
 0x584   :  { %2071 = vmatmul.msk.f32.gmra.mxu3 %vm117_vm4, %v2578_v24  ;;  %692 = vmatpush.msrb.mxu0 %v2080_v20  ;;  %v2078_v24 = vld [vmem:[%s3400_s4 + $0x90] sm:$0xff] }
 0x586   :  { %693 = vmatpush.msrb.mxu0 %v2079_v22 }
 0x588   :  { %694 = vmatpush.msrb.mxu0 %v2078_v24 }
 0x58a   :  { %695 = vmatpush.msrb.mxu0 %v2077_v25 }
 0x58c   :  { %696 = vmatpush.msrb.mxu0 %v2076_v53 }
 0x58e   :  { %697 = vmatpush.msrb.mxu0 %v2075_v1 }
 0x590   :  { %698 = vmatpush.msrb.mxu0 %v2074_v3 }
 0x592   :  { %699 = vmatpush.msrb.mxu0 %v2073_v4 }
 0x594   :  { %700 = vmatpush.msrb.mxu0 %v2072_v8 }
 0x5c4   :  { %v626_v16 = vpop.permute.xlu1 %625 }
 0x5d4   :  { %v630_v37 = vpop.permute.xlu1 %629 }
 0x5dc   :  { %v624_v11 = vpop.permute.xlu0 %623 }
 0x5ee   :  { %v578_v9 = vpop.f32.mrf.mxu2 }
 0x5ef   :  { %v607_v23 = vpop.f32.mrf.mxu3  ;;  %v651_v13 = vsel %vm117_vm4, %v578_v9, %v624_v11 }
 0x5f0   :  { %639 = vrot.lane.b32.xlu2 %v607_v23, %s2328_s19 }
 0x5f6   :  { %v581_v10 = vpop.f32.mrf.mxu2 }
 0x5f7   :  { %v610_v2 = vpop.f32.mrf.mxu3  ;;  %v652_v12 = vsel %vm117_vm4, %v581_v10, %v626_v16 }
 0x5f8   :  { %627 = vrot.lane.b32.xlu2 %v559_v61, %s2327_s18  ;;  %641 = vrot.lane.b32.xlu0 %v610_v2, %s2328_s19 }
 0x5fe   :  { %v584_v27 = vpop.f32.mrf.mxu2 }
 0x5ff   :  { %v613_v5 = vpop.f32.mrf.mxu3 }
 0x600   :  { %643 = vrot.lane.b32.xlu0 %v613_v5, %s2328_s19 }
 0x606   :  { %v587_v34 = vpop.f32.mrf.mxu2 }
 0x607   :  { %v616_v7 = vpop.f32.mrf.mxu3  ;;  %v654_v38 = vsel %vm117_vm4, %v587_v34, %v630_v37 }
 0x608   :  { %645 = vrot.lane.b32.xlu2 %v616_v7, %s2328_s19 }
 0x64a   :  { %v640_v14 = vpop.permute.xlu2 %639 }
 0x64b   :  { %v655_v15 = vsel %vm399_vm3, %v651_v13, %v640_v14 }
 0x64c   :  { %2084 = vmatmul.msk.f32.vlgmr.msrb.gmra.mxu0 %vm417_vm2, %v655_v15 }
 0x652   :  { %v628_v28 = vpop.permute.xlu2 %627 }
 0x653   :  { %v653_v30 = vsel %vm117_vm4, %v584_v27, %v628_v28 }
 0x662   :  { %v646_v36 = vpop.permute.xlu2 %645 }
 0x663   :  { %v658_v35 = vsel %vm399_vm3, %v654_v38, %v646_v36 }
 0x66a   :  { %v642_v18 = vpop.permute.xlu0 %641 }
 0x66b   :  { %v656_v26 = vsel %vm399_vm3, %v652_v12, %v642_v18 }
 0x66c   :  { %2085 = vmatmul.msk.f32.gmra.mxu0 %vm417_vm2, %v656_v26 }
 0x672   :  { %v644_v32 = vpop.permute.xlu0 %643 }
 0x673   :  { %v657_v33 = vsel %vm399_vm3, %v653_v30, %v644_v32 }
 0x674   :  { %2086 = vmatmul.msk.f32.gmra.mxu0 %vm417_vm2, %v657_v33 }
 0x67c   :  { %2087 = vmatmul.msk.f32.gmra.mxu0 %vm417_vm2, %v658_v35 }
 0x6c9   :  { %v702_v39 = vpop.f32.mrf.mxu0 }
 0x6ca   :  { %v703_v60 = vadd.f32 %v702_v39, %v672_v42 }
 0x6cc   :  { %v2769_v41 = vadd.f32 %v703_v60, %v2461_v40 }
 0x6ce   :  { %v718_v63 = vmax.f32 %v2769_v41, 0.0 }
 0x6d0   :  { %v722_v19 = vsel %vm117_vm4, %v718_v63, 0.0 }
 0x6e9   :  { %v705_v43 = vpop.f32.mrf.mxu0 }
 0x6ea   :  { %v706_v44 = vadd.f32 %v705_v43, %v672_v42  ;;  %v810_v43 = vperm.slane %v2503_v29, 2 }
 0x6ec   :  { %v2755_v46 = vadd.f32 %v706_v44, %v2465_v45 }
 0x6ee   :  { %v719_v48 = vmax.f32 %v2755_v46, 0.0 }
 0x6f0   :  { %v725_v49 = vsel %vm117_vm4, %v719_v48, 0.0 }
 0x6f1   :  { %v708_v50 = vpop.f32.mrf.mxu0  ;;  %726 = vadd.xlane.f32.xlu2 %v725_v49 }
 0x6f2   :  { %v709_v51 = vadd.f32 %v708_v50, %v672_v42  ;;  %v815_v50 = vperm.slane %v2508_v31, 2 }
 0x6f4   :  { %v2760_v55 = vadd.f32 %v709_v51, %v2472_v54 }
 0x6f6   :  { %v720_v56 = vmax.f32 %v2760_v55, 0.0 }
 0x6f8   :  { %v728_v57 = vsel %vm117_vm4, %v720_v56, 0.0 }
 0x6f9   :  { %729 = vadd.xlane.f32.xlu1 %v728_v57  ;;  %v711_v58 = vpop.f32.mrf.mxu0 }
 0x6fa   :  { %v712_v59 = vadd.f32 %v711_v58, %v672_v42 }
 0x6fc   :  { %v2765_v61 = vadd.f32 %v712_v59, %v2469_v52 }
 0x6fe   :  { %v721_v62 = vmax.f32 %v2765_v61, 0.0 }
 0x700   :  { %v731_v47 = vsel %vm117_vm4, %v721_v62, 0.0 }
 0x701   :  { %732 = vadd.xlane.f32.xlu0 %v731_v47 }
 0x709   :  { %723 = vadd.xlane.f32.xlu0 %v722_v19 }
 0x764   :  { %v727_v17 = vpop.xlane.xlu2 %726 }
 0x765   :  { %v735_v21 = vmul.f32 %v727_v17, %v2477_v0 }
 0x767   :  { %v739_v20 = vsub.f32 %v719_v48, %v735_v21 }
 0x769   :  { %v743_v22 = vmul.f32 %v739_v20, %v739_v20 }
 0x76b   :  { %v749_v23 = vsel %vm117_vm4, %v743_v22, 0.0 }
 0x76c   :  { %750 = vadd.xlane.f32.xlu0 %v749_v23  ;;  %v730_v24 = vpop.xlane.xlu1 %729 }
 0x76d   :  { %v736_v25 = vmul.f32 %v730_v24, %v2477_v0 }
 0x76f   :  { %v2777_v53 = vsub.f32 %v720_v56, %v736_v25 }
 0x771   :  { %v744_v1 = vmul.f32 %v2777_v53, %v2777_v53 }
 0x773   :  { %v752_v2 = vsel %vm117_vm4, %v744_v1, 0.0 }
 0x774   :  { %v733_v3 = vpop.xlane.xlu0 %732  ;;  %753 = vadd.xlane.f32.xlu2 %v752_v2 }
 0x775   :  { %v737_v4 = vmul.f32 %v733_v3, %v2477_v0 }
 0x777   :  { %v2783_v5 = vsub.f32 %v721_v62, %v737_v4 }
 0x779   :  { %v745_v7 = vmul.f32 %v2783_v5, %v2783_v5 }
 0x77b   :  { %v755_v8 = vsel %vm117_vm4, %v745_v7, 0.0 }
 0x77c   :  { %756 = vadd.xlane.f32.xlu1 %v755_v8  ;;  %v724_v9 = vpop.xlane.xlu0 %723 }
 0x77d   :  { %v734_v11 = vmul.f32 %v724_v9, %v2477_v0 }
 0x77f   :  { %v2789_v13 = vsub.f32 %v718_v63, %v734_v11 }
 0x781   :  { %v742_v14 = vmul.f32 %v2789_v13, %v2789_v13 }
 0x783   :  { %v746_v15 = vsel %vm117_vm4, %v742_v14, 0.0 }
 0x784   :  { %747 = vadd.xlane.f32.xlu1 %v746_v15 }
 0x7df   :  { %v751_v10 = vpop.xlane.xlu0 %750 }
 0x7e0   :  { %v759_v16 = vmul.f32 %v751_v10, %v2477_v0 }
 0x7e2   :  { %v763_v12 = vadd.f32 1e-05, %v759_v16  ;;  %v2807_v16 = vld [vmem:[%s3404_s8 + $0x40] sm:$0xff] }
 0x7e4   :  { %2252 = vrsqrt.f32 %v763_v12  ;;  %vm782_vm5 = vweird.f32 %v763_v12 }
 0x7e7   :  { %v754_v18 = vpop.xlane.xlu2 %753 }
 0x7e8   :  { %v760_v26 = vmul.f32 %v754_v18, %v2477_v0  ;;  %v2827_v18 = vld [vmem:[%s3404_s8 + $0x68] sm:$0xff] }
 0x7ea   :  { %v2253_v27 = vpop.eup %2252  ;;  %v764_v28 = vadd.f32 1e-05, %v760_v26  ;;  %v2837_v26 = vld [vmem:[%s3404_s8 + $0x50] sm:$0xff] }
 0x7eb   :  { %v777_v30 = vmul.f32 %v2253_v27, %v763_v12  ;;  %vm783_vm1 = vweird.f32 %v2253_v27  ;;  %v2812_v12 = vld [vmem:[%s3404_s8 + $0x60] sm:$0xff] }
 0x7ec   :  { %2254 = vrsqrt.f32 %v764_v28  ;;  %vm784_vm6 = vmor %vm782_vm5, %vm783_vm1  ;;  %vm792_vm8 = vweird.f32 %v764_v28 }
 0x7ed   :  { %v778_v32 = vmul.f32 %v2253_v27, %v777_v30  ;;  %v2858_v30 = vld [vmem:[%s3404_s8 + $0x58] sm:$0xff] }
 0x7ef   :  { %v779_v33 = vmul.f32 0.5, %v778_v32  ;;  %v757_v34 = vpop.xlane.xlu1 %756  ;;  %v2115_v32 = vld [vmem:[%s3400_s4 + $0x118] sm:$0xff] }
 0x7f0   :  { %v761_v36 = vmul.f32 %v757_v34, %v2477_v0  ;;  %982 = vmatpush.msra.mxu3 %v2115_v32  ;;  %v2113_v34 = vld [vmem:[%s3400_s4 + $0x108] sm:$0xff] }
 0x7f1   :  { %v780_v37 = vsub.f32 1.5, %v779_v33  ;;  %v2114_v33 = vld [vmem:[%s3400_s4 + $0x110] sm:$0xff] }
 0x7f2   :  { %v2255_v38 = vpop.eup %2254  ;;  %v765_v35 = vadd.f32 1e-05, %v761_v36  ;;  %983 = vmatpush.msra.mxu3 %v2114_v33  ;;  %v2112_v36 = vld [vmem:[%s3400_s4 + $0x100] sm:$0xff] }
 0x7f3   :  { %v781_v39 = vmul.f32 %v2253_v27, %v780_v37  ;;  %v787_v42 = vmul.f32 %v2255_v38, %v764_v28  ;;  %vm793_vm7 = vweird.f32 %v2255_v38  ;;  %v2851_v28 = vld [vmem:[%s3404_s8 + $0x78] sm:$0xff] }
 0x7f4   :  { %2256 = vrsqrt.f32 %v765_v35  ;;  %vm794_vm9 = vmor %vm792_vm8, %vm793_vm7  ;;  %vm802_vm11 = vweird.f32 %v765_v35  ;;  %984 = vmatpush.msra.mxu3 %v2113_v34  ;;  %v2111_v37 = vld [vmem:[%s3400_s4 + $0xf8] sm:$0xff] }
 0x7f5   :  { %v785_v44 = vsel %vm784_vm6, %v2253_v27, %v781_v39  ;;  %v788_v48 = vmul.f32 %v2255_v38, %v787_v42  ;;  %v2842_v27 = vld [vmem:[%s3404_s8 + $0x70] sm:$0xff]  ;;  %v2109_v39 = vld [vmem:[%s3400_s4 + $0xe8] sm:$0xff]  ;;  %v2108_v42 = vld [vmem:[%s3400_s4 + $0xe0] sm:$0xff] }
 0x7f6   :  { %v807_v49 = vmul.f32 %v785_v44, %v739_v20  ;;  %985 = vmatpush.msra.mxu3 %v2112_v36 }
 0x7f7   :  { %v789_v51 = vmul.f32 0.5, %v788_v48  ;;  %v748_v56 = vpop.xlane.xlu1 %747  ;;  %v2106_v48 = vld [vmem:[%s3400_s4 + $0xd0] sm:$0xff] }
 0x7f8   :  { %v758_v57 = vmul.f32 %v748_v56, %v2477_v0  ;;  %v812_v58 = vmul.f32 %v810_v43, %v807_v49  ;;  %986 = vmatpush.msra.mxu3 %v2111_v37  ;;  %v2105_v49 = vld [vmem:[%s3400_s4 + $0xc8] sm:$0xff]  ;;  %v2104_v56 = vld [vmem:[%s3400_s4 + $0xc0] sm:$0xff] }
 0x7f9   :  { %v790_v59 = vsub.f32 1.5, %v789_v51 }
 0x7fa   :  { %v2257_v60 = vpop.eup %2256  ;;  %v762_v62 = vadd.f32 1e-05, %v758_v57  ;;  %v817_v47 = vadd.f32 %v815_v50, %v812_v58 }
 0x7fb   :  { %v797_v63 = vmul.f32 %v2257_v60, %v765_v35  ;;  %v791_v19 = vmul.f32 %v2255_v38, %v790_v59  ;;  %vm803_vm10 = vweird.f32 %v2257_v60  ;;  %v2110_v35 = vld [vmem:[%s3400_s4 + $0xf0] sm:$0xff] }
 0x7fc   :  { %2258 = vrsqrt.f32 %v762_v62  ;;  %918 = vrot.lane.b32.xlu1 %v817_v47, %s2327_s18  ;;  %vm804_vm12 = vmor %vm802_vm11, %vm803_vm10  ;;  %vm772_vm14 = vweird.f32 %v762_v62  ;;  %987 = vmatpush.msra.mxu3 %v2110_v35 }
 0x7fd   :  { %v798_v29 = vmul.f32 %v2257_v60, %v797_v63  ;;  %v795_v31 = vsel %vm794_vm9, %v2255_v38, %v791_v19 }
 0x7fe   :  { %v808_v24 = vmul.f32 %v795_v31, %v2777_v53  ;;  %988 = vmatpush.msra.mxu3 %v2109_v39 }
 0x7ff   :  { %v799_v17 = vmul.f32 0.5, %v798_v29 }
 0x800   :  { %v813_v7 = vmul.f32 %v810_v43, %v808_v24  ;;  %989 = vmatpush.msra.mxu3 %v2108_v42 }
 0x801   :  { %v800_v21 = vsub.f32 1.5, %v799_v17 }
 0x802   :  { %v2259_v20 = vpop.eup %2258  ;;  %v818_v14 = vadd.f32 %v815_v50, %v813_v7  ;;  %v965_v7 = vperm.slane %v2645_v6, 2 }
 0x803   :  { %v801_v22 = vmul.f32 %v2257_v60, %v800_v21  ;;  %v767_v23 = vmul.f32 %v2259_v20, %v762_v62  ;;  %vm773_vm13 = vweird.f32 %v2259_v20 }
 0x804   :  { %vm774_vm15 = vmor %vm772_vm14, %vm773_vm13 }
 0x805   :  { %v805_v25 = vsel %vm804_vm12, %v2257_v60, %v801_v22  ;;  %v768_v1 = vmul.f32 %v2259_v20, %v767_v23 }
 0x806   :  { %v809_v2 = vmul.f32 %v805_v25, %v2783_v5 }
 0x807   :  { %v769_v3 = vmul.f32 0.5, %v768_v1 }
 0x808   :  { %v814_v4 = vmul.f32 %v810_v43, %v809_v2 }
 0x809   :  { %v770_v8 = vsub.f32 1.5, %v769_v3 }
 0x80a   :  { %v819_v9 = vadd.f32 %v815_v50, %v814_v4 }
 0x80b   :  { %v771_v11 = vmul.f32 %v2259_v20, %v770_v8 }
 0x80c   :  { %849 = vmatpush.msra.mxu1 %v819_v9  ;;  %895 = vmatpush.msra.mxu2 %v819_v9 }
 0x80d   :  { %v775_v15 = vsel %vm774_vm15, %v2259_v20, %v771_v11 }
 0x80e   :  { %850 = vmatpush.msra.mxu1 %v818_v14  ;;  %896 = vmatpush.msra.mxu2 %v818_v14  ;;  %v806_v53 = vmul.f32 %v775_v15, %v2789_v13  ;;  %v2822_v13 = vld [vmem:[%s3404_s8 + $0x48] sm:$0xff] }
 0x810   :  { %851 = vmatpush.msra.mxu1 %v817_v47  ;;  %897 = vmatpush.msra.mxu2 %v817_v47  ;;  %v811_v5 = vmul.f32 %v810_v43, %v806_v53  ;;  %v2107_v43 = vld [vmem:[%s3400_s4 + $0xd8] sm:$0xff] }
 0x811   :  { %990 = vmatpush.msra.mxu3 %v2107_v43 }
 0x812   :  { %v816_v10 = vadd.f32 %v815_v50, %v811_v5 }
 0x813   :  { %991 = vmatpush.msra.mxu3 %v2106_v48 }
 0x814   :  { %916 = vrot.lane.b32.xlu2 %v816_v10, %s2327_s18  ;;  %852 = vmatpush.msra.mxu1 %v816_v10 }
 0x815   :  { %898 = vmatpush.msra.mxu2 %v816_v10  ;;  %2092 = vmatmul.msk.f32.vlgmr.msra.gmra.mxu1 %vm117_vm4, %v2807_v16 }
 0x816   :  { %2100 = vmatmul.msk.f32.vlgmr.msra.gmra.mxu2 %vm117_vm4, %v2812_v12  ;;  %992 = vmatpush.msra.mxu3 %v2105_v49 }
 0x818   :  { %993 = vmatpush.msra.mxu3 %v2104_v56 }
 0x81c   :  { %920 = vrot.lane.b32.xlu2 %v818_v14, %s2327_s18 }
 0x81d   :  { %2093 = vmatmul.msk.f32.gmra.mxu1 %vm117_vm4, %v2822_v13 }
 0x81e   :  { %2101 = vmatmul.msk.f32.gmra.mxu2 %vm117_vm4, %v2827_v18 }
 0x825   :  { %2094 = vmatmul.msk.f32.gmra.mxu1 %vm117_vm4, %v2837_v26 }
 0x826   :  { %2102 = vmatmul.msk.f32.gmra.mxu2 %vm117_vm4, %v2842_v27 }
 0x82d   :  { %2095 = vmatmul.msk.f32.gmra.mxu1 %vm117_vm4, %v2858_v30 }
 0x82e   :  { %2103 = vmatmul.msk.f32.gmra.mxu2 %vm117_vm4, %v2851_v28 }
 0x86e   :  { %v917_v58 = vpop.permute.xlu2 %916  ;;  %v919_v63 = vpop.permute.xlu1 %918 }
 0x876   :  { %v921_v21 = vpop.permute.xlu2 %920 }
 0x892   :  { %v854_v57 = vpop.f32.mrf.mxu1 }
 0x893   :  { %v944_v59 = vsel %vm117_vm4, %v854_v57, %v917_v58 }
 0x899   :  { %v900_v38 = vpop.f32.mrf.mxu2 }
 0x89a   :  { %932 = vrot.lane.b32.xlu0 %v900_v38, %s2328_s19  ;;  %v857_v62 = vpop.f32.mrf.mxu1 }
 0x89b   :  { %v945_v19 = vsel %vm117_vm4, %v857_v62, %v919_v63 }
 0x8a1   :  { %v903_v44 = vpop.f32.mrf.mxu2 }
 0x8a2   :  { %934 = vrot.lane.b32.xlu0 %v903_v44, %s2328_s19  ;;  %v860_v31 = vpop.f32.mrf.mxu1 }
 0x8a3   :  { %v946_v20 = vsel %vm117_vm4, %v860_v31, %v921_v21 }
 0x8a9   :  { %v906_v50 = vpop.f32.mrf.mxu2 }
 0x8aa   :  { %922 = vrot.lane.b32.xlu0 %v819_v9, %s2327_s18  ;;  %936 = vrot.lane.b32.xlu1 %v906_v50, %s2328_s19  ;;  %v863_v25 = vpop.f32.mrf.mxu1 }
 0x8b1   :  { %v909_v51 = vpop.f32.mrf.mxu2 }
 0x8b2   :  { %938 = vrot.lane.b32.xlu2 %v909_v51, %s2328_s19 }
 0x90c   :  { %v933_v60 = vpop.permute.xlu0 %932  ;;  %v939_v2 = vpop.permute.xlu2 %938 }
 0x90d   :  { %v948_v47 = vsel %vm399_vm3, %v944_v59, %v933_v60 }
 0x90e   :  { %2116 = vmatmul.msk.f32.vlgmr.msra.gmra.mxu3 %vm417_vm2, %v948_v47 }
 0x914   :  { %v935_v29 = vpop.permute.xlu0 %934 }
 0x915   :  { %v949_v17 = vsel %vm399_vm3, %v945_v19, %v935_v29 }
 0x916   :  { %2117 = vmatmul.msk.f32.gmra.mxu3 %vm417_vm2, %v949_v17 }
 0x91c   :  { %v937_v22 = vpop.permute.xlu1 %936  ;;  %v923_v24 = vpop.permute.xlu0 %922 }
 0x91d   :  { %v950_v23 = vsel %vm399_vm3, %v946_v20, %v937_v22  ;;  %v947_v1 = vsel %vm117_vm4, %v863_v25, %v923_v24 }
 0x91e   :  { %2118 = vmatmul.msk.f32.gmra.mxu3 %vm417_vm2, %v950_v23  ;;  %v951_v3 = vsel %vm399_vm3, %v947_v1, %v939_v2 }
 0x926   :  { %2119 = vmatmul.msk.f32.gmra.mxu3 %vm417_vm2, %v951_v3 }
 0x991   :  { %v995_v4 = vpop.f32.mrf.mxu3 }
 0x992   :  { %v996_v36 = vadd.f32 %v995_v4, %v965_v7 }
 0x994   :  { %v1007_v6 = vmax.f32 %v996_v36, 0.0 }
 0x996   :  { %v1011_v38 = vsel %vm117_vm4, %v1007_v6, 0.0 }
 0x999   :  { %v998_v8 = vpop.f32.mrf.mxu3 }
 0x99a   :  { %v999_v9 = vadd.f32 %v998_v8, %v965_v7 }
 0x99c   :  { %v1008_v11 = vmax.f32 %v999_v9, 0.0 }
 0x99e   :  { %v1014_v14 = vsel %vm117_vm4, %v1008_v11, 0.0 }
 0x99f   :  { %1015 = vadd.xlane.f32.xlu2 %v1014_v14 }
 0x9a1   :  { %v1001_v15 = vpop.f32.mrf.mxu3 }
 0x9a2   :  { %v1002_v53 = vadd.f32 %v1001_v15, %v965_v7 }
 0x9a4   :  { %v1009_v5 = vmax.f32 %v1002_v53, 0.0  ;;  %v2946_v53 = vld [vmem:[%s3402_s6] sm:$0x7f] }
 0x9a6   :  { %v1017_v10 = vsel %vm117_vm4, %v1009_v5, 0.0 }
 0x9a7   :  { %1018 = vadd.xlane.f32.xlu0 %v1017_v10 }
 0x9a9   :  { %v1004_v32 = vpop.f32.mrf.mxu3 }
 0x9aa   :  { %v1005_v33 = vadd.f32 %v1004_v32, %v965_v7 }
 0x9ac   :  { %v1010_v34 = vmax.f32 %v1005_v33, 0.0 }
 0x9ae   :  { %v1020_v37 = vsel %vm117_vm4, %v1010_v34, 0.0 }
 0x9af   :  { %1021 = vadd.xlane.f32.xlu1 %v1020_v37 }
 0x9b7   :  { %1012 = vadd.xlane.f32.xlu1 %v1011_v38 }
 0xa12   :  { %v1016_v35 = vpop.xlane.xlu2 %1015 }
 0xa13   :  { %v1024_v39 = vmul.f32 %v1016_v35, %v2477_v0 }
 0xa15   :  { %v1028_v42 = vsub.f32 %v1008_v11, %v1024_v39 }
 0xa17   :  { %v1032_v43 = vmul.f32 %v1028_v42, %v1028_v42 }
 0xa19   :  { %v1038_v44 = vsel %vm117_vm4, %v1032_v43, 0.0 }
 0xa1a   :  { %1039 = vadd.xlane.f32.xlu1 %v1038_v44  ;;  %v1019_v48 = vpop.xlane.xlu0 %1018 }
 0xa1b   :  { %v1025_v49 = vmul.f32 %v1019_v48, %v2477_v0 }
 0xa1d   :  { %v2923_v50 = vsub.f32 %v1009_v5, %v1025_v49  ;;  %v1099_v5 = vperm.slane %v2946_v53, 3 }
 0xa1f   :  { %v1033_v51 = vmul.f32 %v2923_v50, %v2923_v50 }
 0xa21   :  { %v1041_v56 = vsel %vm117_vm4, %v1033_v51, 0.0 }
 0xa22   :  { %v1022_v57 = vpop.xlane.xlu1 %1021  ;;  %1042 = vadd.xlane.f32.xlu0 %v1041_v56 }
 0xa23   :  { %v1026_v58 = vmul.f32 %v1022_v57, %v2477_v0 }
 0xa25   :  { %v2929_v59 = vsub.f32 %v1010_v34, %v1026_v58  ;;  %v2952_v34 = vld [vmem:[%s3403_s7] sm:$0x7f] }
 0xa26   :  { %v1104_v36 = vperm.slane %v2952_v34, 3 }
 0xa27   :  { %v1034_v60 = vmul.f32 %v2929_v59, %v2929_v59 }
 0xa29   :  { %v1044_v62 = vsel %vm117_vm4, %v1034_v60, 0.0 }
 0xa2a   :  { %1045 = vadd.xlane.f32.xlu2 %v1044_v62  ;;  %v1013_v47 = vpop.xlane.xlu1 %1012 }
 0xa2b   :  { %v1023_v63 = vmul.f32 %v1013_v47, %v2477_v0 }
 0xa2d   :  { %v2935_v19 = vsub.f32 %v1007_v6, %v1023_v63 }
 0xa2f   :  { %v1031_v29 = vmul.f32 %v2935_v19, %v2935_v19 }
 0xa31   :  { %v1035_v17 = vsel %vm117_vm4, %v1031_v29, 0.0 }
 0xa32   :  { %1036 = vadd.xlane.f32.xlu2 %v1035_v17 }
 0xa8d   :  { %v1040_v31 = vpop.xlane.xlu1 %1039 }
 0xa8e   :  { %v1048_v21 = vmul.f32 %v1040_v31, %v2477_v0 }
 0xa90   :  { %v1052_v20 = vadd.f32 1e-05, %v1048_v21 }
 0xa92   :  { %2260 = vrsqrt.f32 %v1052_v20  ;;  %vm1071_vm1 = vweird.f32 %v1052_v20 }
 0xa95   :  { %v1043_v22 = vpop.xlane.xlu0 %1042 }
 0xa96   :  { %v1049_v23 = vmul.f32 %v1043_v22, %v2477_v0 }
 0xa98   :  { %v2261_v24 = vpop.eup %2260  ;;  %v1053_v25 = vadd.f32 1e-05, %v1049_v23 }
 0xa99   :  { %v1066_v1 = vmul.f32 %v2261_v24, %v1052_v20  ;;  %vm1072_vm0 = vweird.f32 %v2261_v24 }
 0xa9a   :  { %2262 = vrsqrt.f32 %v1053_v25  ;;  %vm1073_vm5 = vmor %vm1071_vm1, %vm1072_vm0  ;;  %vm1081_vm7 = vweird.f32 %v1053_v25 }
 0xa9b   :  { %v1067_v2 = vmul.f32 %v2261_v24, %v1066_v1 }
 0xa9d   :  { %v1068_v3 = vmul.f32 0.5, %v1067_v2  ;;  %v1046_v4 = vpop.xlane.xlu2 %1045 }
 0xa9e   :  { %v1050_v7 = vmul.f32 %v1046_v4, %v2477_v0 }
 0xa9f   :  { %v1069_v8 = vsub.f32 1.5, %v1068_v3 }
 0xaa0   :  { %v2263_v9 = vpop.eup %2262  ;;  %v1054_v11 = vadd.f32 1e-05, %v1050_v7 }
 0xaa1   :  { %v1070_v14 = vmul.f32 %v2261_v24, %v1069_v8  ;;  %v1076_v15 = vmul.f32 %v2263_v9, %v1053_v25  ;;  %vm1082_vm6 = vweird.f32 %v2263_v9 }
 0xaa2   :  { %2264 = vrsqrt.f32 %v1054_v11  ;;  %vm1083_vm8 = vmor %vm1081_vm7, %vm1082_vm6  ;;  %vm1091_vm10 = vweird.f32 %v1054_v11 }
 0xaa3   :  { %v1074_v10 = vsel %vm1073_vm5, %v2261_v24, %v1070_v14  ;;  %v1077_v32 = vmul.f32 %v2263_v9, %v1076_v15  ;;  %v2129_v14 = vld [vmem:[%s3400_s4 + $0x128] sm:$0xff]  ;;  %v2128_v15 = vld [vmem:[%s3400_s4 + $0x120] sm:$0xff] }
 0xaa4   :  { %v1096_v33 = vmul.f32 %v1074_v10, %v1028_v42 }
 0xaa5   :  { %v1078_v37 = vmul.f32 0.5, %v1077_v32  ;;  %v1037_v6 = vpop.xlane.xlu2 %1036 }
 0xaa6   :  { %v1047_v38 = vmul.f32 %v1037_v6, %v2477_v0  ;;  %v1101_v35 = vmul.f32 %v1099_v5, %v1096_v33 }
 0xaa7   :  { %v1079_v39 = vsub.f32 1.5, %v1078_v37 }
 0xaa8   :  { %v2265_v43 = vpop.eup %2264  ;;  %v1051_v44 = vadd.f32 1e-05, %v1047_v38  ;;  %v1106_v48 = vadd.f32 %v1104_v36, %v1101_v35 }
 0xaa9   :  { %v1086_v49 = vmul.f32 %v2265_v43, %v1054_v11  ;;  %v1080_v42 = vmul.f32 %v2263_v9, %v1079_v39  ;;  %vm1092_vm9 = vweird.f32 %v2265_v43  ;;  %v2130_v11 = vld [vmem:[%s3400_s4 + $0x130] sm:$0xff] }
 0xaaa   :  { %2266 = vrsqrt.f32 %v1051_v44  ;;  %1173 = vrot.lane.b32.xlu2 %v1106_v48, %s2327_s18  ;;  %vm1093_vm11 = vmor %vm1091_vm10, %vm1092_vm9  ;;  %vm1061_vm13 = vweird.f32 %v1051_v44 }
 0xaab   :  { %v1087_v51 = vmul.f32 %v2265_v43, %v1086_v49  ;;  %v1084_v57 = vsel %vm1083_vm8, %v2263_v9, %v1080_v42  ;;  %v2131_v9 = vld [vmem:[%s3400_s4 + $0x138] sm:$0xff] }
 0xaac   :  { %v1097_v63 = vmul.f32 %v1084_v57, %v2923_v50 }
 0xaad   :  { %v1088_v56 = vmul.f32 0.5, %v1087_v51 }
 0xaae   :  { %v1102_v22 = vmul.f32 %v1099_v5, %v1097_v63 }
 0xaaf   :  { %v1089_v58 = vsub.f32 1.5, %v1088_v56 }
 0xab0   :  { %v2267_v60 = vpop.eup %2266  ;;  %v1107_v1 = vadd.f32 %v1104_v36, %v1102_v22 }
 0xab1   :  { %v1090_v62 = vmul.f32 %v2265_v43, %v1089_v58  ;;  %v1056_v47 = vmul.f32 %v2267_v60, %v1051_v44  ;;  %vm1062_vm12 = vweird.f32 %v2267_v60 }
 0xab2   :  { %vm1063_vm14 = vmor %vm1061_vm13, %vm1062_vm12 }
 0xab3   :  { %v1094_v29 = vsel %vm1093_vm11, %v2265_v43, %v1090_v62  ;;  %v1057_v17 = vmul.f32 %v2267_v60, %v1056_v47  ;;  %v3034_v47 = vld [vmem:[%s3401_s5] sm:$0x3f] }
 0xab4   :  { %v1098_v31 = vmul.f32 %v1094_v29, %v2929_v59  ;;  %v1220_v63 = vperm.slane %v3034_v47, 3 }
 0xab5   :  { %v1058_v21 = vmul.f32 0.5, %v1057_v17 }
 0xab6   :  { %v1103_v20 = vmul.f32 %v1099_v5, %v1098_v31 }
 0xab7   :  { %v1059_v23 = vsub.f32 1.5, %v1058_v21 }
 0xab8   :  { %v1108_v24 = vadd.f32 %v1104_v36, %v1103_v20 }
 0xab9   :  { %v1060_v25 = vmul.f32 %v2267_v60, %v1059_v23 }
 0xaba   :  { %1121 = vmatpush.msra.mxu0 %v1108_v24  ;;  %1150 = vmatpush.msrb.mxu1 %v1108_v24 }
 0xabb   :  { %v1064_v2 = vsel %vm1063_vm14, %v2267_v60, %v1060_v25 }
 0xabc   :  { %1122 = vmatpush.msra.mxu0 %v1107_v1  ;;  %1151 = vmatpush.msrb.mxu1 %v1107_v1  ;;  %v1095_v50 = vmul.f32 %v1064_v2, %v2935_v19  ;;  %v2132_v19 = vld [vmem:[%s3400_s4 + $0x140] sm:$0xff] }
 0xabe   :  { %1123 = vmatpush.msra.mxu0 %v1106_v48  ;;  %1152 = vmatpush.msrb.mxu1 %v1106_v48  ;;  %v1100_v59 = vmul.f32 %v1099_v5, %v1095_v50 }
 0xac0   :  { %v1105_v3 = vadd.f32 %v1104_v36, %v1100_v59 }
 0xac2   :  { %1171 = vrot.lane.b32.xlu0 %v1105_v3, %s2327_s18  ;;  %1124 = vmatpush.msra.mxu0 %v1105_v3 }
 0xac3   :  { %1153 = vmatpush.msrb.mxu1 %v1105_v3  ;;  %2120 = vmatmul.msk.f32.vlgmr.msra.gmra.mxu0 %vm117_vm4, %v2807_v16  ;;  %v2139_v16 = vld [vmem:[%s3400_s4 + $0x178] sm:$0xff] }
 0xac4   :  { %2124 = vmatmul.msk.f32.vlgmr.msrb.gmra.mxu1 %vm117_vm4, %v2812_v12  ;;  %v2138_v12 = vld [vmem:[%s3400_s4 + $0x170] sm:$0xff]  ;;  %1237 = vmatpush.msrb.mxu2 %v2139_v16 }
 0xac6   :  { %1238 = vmatpush.msrb.mxu2 %v2138_v12 }
 0xacb   :  { %2121 = vmatmul.msk.f32.gmra.mxu0 %vm117_vm4, %v2822_v13  ;;  %v2137_v13 = vld [vmem:[%s3400_s4 + $0x168] sm:$0xff] }
 0xacc   :  { %2125 = vmatmul.msk.f32.gmra.mxu1 %vm117_vm4, %v2827_v18  ;;  %v2136_v18 = vld [vmem:[%s3400_s4 + $0x160] sm:$0xff]  ;;  %1239 = vmatpush.msrb.mxu2 %v2137_v13 }
 0xace   :  { %1240 = vmatpush.msrb.mxu2 %v2136_v18 }
 0xad3   :  { %2122 = vmatmul.msk.f32.gmra.mxu0 %vm117_vm4, %v2837_v26  ;;  %v2135_v26 = vld [vmem:[%s3400_s4 + $0x158] sm:$0xff] }
 0xad4   :  { %2126 = vmatmul.msk.f32.gmra.mxu1 %vm117_vm4, %v2842_v27  ;;  %1241 = vmatpush.msrb.mxu2 %v2135_v26 }
 0xadb   :  { %2123 = vmatmul.msk.f32.gmra.mxu0 %vm117_vm4, %v2858_v30  ;;  %v2133_v30 = vld [vmem:[%s3400_s4 + $0x148] sm:$0xff] }
 0xadc   :  { %2127 = vmatmul.msk.f32.gmra.mxu1 %vm117_vm4, %v2851_v28  ;;  %v2134_v28 = vld [vmem:[%s3400_s4 + $0x150] sm:$0xff] }
 0xadd   :  { %1242 = vmatpush.msrb.mxu2 %v2134_v28 }
 0xadf   :  { %1243 = vmatpush.msrb.mxu2 %v2133_v30 }
 0xae1   :  { %1244 = vmatpush.msrb.mxu2 %v2132_v19 }
 0xae3   :  { %1245 = vmatpush.msrb.mxu2 %v2131_v9 }
 0xae5   :  { %1246 = vmatpush.msrb.mxu2 %v2130_v11 }
 0xae7   :  { %1247 = vmatpush.msrb.mxu2 %v2129_v14 }
 0xae9   :  { %1248 = vmatpush.msrb.mxu2 %v2128_v15 }
 0xb04   :  { %v1174_v6 = vpop.permute.xlu2 %1173 }
 0xb34   :  { %v1172_v10 = vpop.permute.xlu0 %1171 }
 0xb40   :  { %v1126_v5 = vpop.f32.mrf.mxu0 }
 0xb41   :  { %v1155_v27 = vpop.f32.mrf.mxu1  ;;  %v1199_v32 = vsel %vm117_vm4, %v1126_v5, %v1172_v10 }
 0xb42   :  { %1187 = vrot.lane.b32.xlu1 %v1155_v27, %s2328_s19 }
 0xb48   :  { %v1129_v37 = vpop.f32.mrf.mxu0 }
 0xb49   :  { %v1158_v4 = vpop.f32.mrf.mxu1  ;;  %v1200_v38 = vsel %vm117_vm4, %v1129_v37, %v1174_v6 }
 0xb4a   :  { %1177 = vrot.lane.b32.xlu1 %v1108_v24, %s2327_s18  ;;  %1189 = vrot.lane.b32.xlu0 %v1158_v4, %s2328_s19 }
 0xb50   :  { %v1132_v43 = vpop.f32.mrf.mxu0 }
 0xb51   :  { %v1161_v7 = vpop.f32.mrf.mxu1 }
 0xb52   :  { %1175 = vrot.lane.b32.xlu0 %v1107_v1, %s2327_s18  ;;  %1191 = vrot.lane.b32.xlu2 %v1161_v7, %s2328_s19 }
 0xb58   :  { %v1135_v56 = vpop.f32.mrf.mxu0 }
 0xb59   :  { %v1164_v8 = vpop.f32.mrf.mxu1 }
 0xb5a   :  { %1193 = vrot.lane.b32.xlu0 %v1164_v8, %s2328_s19 }
 0xbac   :  { %v1192_v48 = vpop.permute.xlu2 %1191 }
 0xbb4   :  { %v1188_v33 = vpop.permute.xlu1 %1187 }
 0xbb5   :  { %v1203_v36 = vsel %vm399_vm3, %v1199_v32, %v1188_v33 }
 0xbb6   :  { %2140 = vmatmul.msk.f32.vlgmr.msrb.gmra.mxu2 %vm417_vm2, %v1203_v36 }
 0xbbc   :  { %v1190_v35 = vpop.permute.xlu0 %1189  ;;  %v1178_v51 = vpop.permute.xlu1 %1177 }
 0xbbd   :  { %v1204_v39 = vsel %vm399_vm3, %v1200_v38, %v1190_v35  ;;  %v1202_v57 = vsel %vm117_vm4, %v1135_v56, %v1178_v51 }
 0xbbe   :  { %2141 = vmatmul.msk.f32.gmra.mxu2 %vm417_vm2, %v1204_v39 }
 0xbc4   :  { %v1176_v44 = vpop.permute.xlu0 %1175 }
 0xbc5   :  { %v1201_v49 = vsel %vm117_vm4, %v1132_v43, %v1176_v44 }
 0xbc6   :  { %v1205_v42 = vsel %vm399_vm3, %v1201_v49, %v1192_v48 }
 0xbc7   :  { %2142 = vmatmul.msk.f32.gmra.mxu2 %vm417_vm2, %v1205_v42 }
 0xbcc   :  { %v1194_v58 = vpop.permute.xlu0 %1193 }
 0xbcd   :  { %v1206_v60 = vsel %vm399_vm3, %v1202_v57, %v1194_v58 }
 0xbcf   :  { %2143 = vmatmul.msk.f32.gmra.mxu2 %vm417_vm2, %v1206_v60 }
 0xc39   :  { %v1250_v62 = vpop.f32.mrf.mxu2 }
 0xc3a   :  { %v1251_v59 = vadd.f32 %v1250_v62, %v1220_v63 }
 0xc3c   :  { %v3052_v16 = vadd.f32 %v1251_v59, %v2769_v41 }
 0xc41   :  { %v1253_v29 = vpop.f32.mrf.mxu2 }
 0xc42   :  { %v1254_v17 = vadd.f32 %v1253_v29, %v1220_v63  ;;  %v1358_v29 = vperm.slane %v2946_v53, 4 }
 0xc44   :  { %v3038_v31 = vadd.f32 %v1254_v17, %v2755_v46 }
 0xc46   :  { %v1267_v21 = vmax.f32 %v3038_v31, 0.0 }
 0xc48   :  { %v1273_v20 = vsel %vm117_vm4, %v1267_v21, 0.0 }
 0xc49   :  { %1274 = vadd.xlane.f32.xlu0 %v1273_v20 }
 0xc4a   :  { %v1256_v22 = vpop.f32.mrf.mxu2 }
 0xc4b   :  { %v1257_v23 = vadd.f32 %v1256_v22, %v1220_v63  ;;  %v1363_v22 = vperm.slane %v2952_v34, 4 }
 0xc4d   :  { %v3043_v24 = vadd.f32 %v1257_v23, %v2760_v55  ;;  %v1266_v55 = vmax.f32 %v3052_v16, 0.0 }
 0xc4f   :  { %v1268_v25 = vmax.f32 %v3043_v24, 0.0  ;;  %v1270_v13 = vsel %vm117_vm4, %v1266_v55, 0.0 }
 0xc51   :  { %v1276_v1 = vsel %vm117_vm4, %v1268_v25, 0.0 }
 0xc52   :  { %1277 = vadd.xlane.f32.xlu1 %v1276_v1  ;;  %v1259_v2 = vpop.f32.mrf.mxu2 }
 0xc53   :  { %v1260_v50 = vadd.f32 %v1259_v2, %v1220_v63 }
 0xc55   :  { %v3048_v46 = vadd.f32 %v1260_v50, %v2765_v61 }
 0xc57   :  { %v1269_v3 = vmax.f32 %v3048_v46, 0.0 }
 0xc59   :  { %v1279_v12 = vsel %vm117_vm4, %v1269_v3, 0.0 }
 0xc5a   :  { %1280 = vadd.xlane.f32.xlu2 %v1279_v12 }
 0xc62   :  { %1271 = vadd.xlane.f32.xlu2 %v1270_v13 }
 0xcbc   :  { %v1275_v18 = vpop.xlane.xlu0 %1274 }
 0xcbd   :  { %v1283_v26 = vmul.f32 %v1275_v18, %v2477_v0 }
 0xcbf   :  { %v1287_v27 = vsub.f32 %v1267_v21, %v1283_v26 }
 0xcc1   :  { %v1291_v28 = vmul.f32 %v1287_v27, %v1287_v27 }
 0xcc3   :  { %v1297_v61 = vsel %vm117_vm4, %v1291_v28, 0.0 }
 0xcc4   :  { %1298 = vadd.xlane.f32.xlu2 %v1297_v61 }
 0xcc5   :  { %v1278_v30 = vpop.xlane.xlu1 %1277 }
 0xcc6   :  { %v1284_v41 = vmul.f32 %v1278_v30, %v2477_v0 }
 0xcc8   :  { %v3060_v19 = vsub.f32 %v1268_v25, %v1284_v41 }
 0xcca   :  { %v1292_v4 = vmul.f32 %v3060_v19, %v3060_v19 }
 0xccc   :  { %v1300_v7 = vsel %vm117_vm4, %v1292_v4, 0.0 }
 0xccd   :  { %1301 = vadd.xlane.f32.xlu0 %v1300_v7  ;;  %v1281_v8 = vpop.xlane.xlu2 %1280 }
 0xcce   :  { %v1285_v9 = vmul.f32 %v1281_v8, %v2477_v0 }
 0xcd0   :  { %v3066_v11 = vsub.f32 %v1269_v3, %v1285_v9 }
 0xcd2   :  { %v1293_v14 = vmul.f32 %v3066_v11, %v3066_v11 }
 0xcd4   :  { %v1303_v15 = vsel %vm117_vm4, %v1293_v14, 0.0 }
 0xcd5   :  { %1304 = vadd.xlane.f32.xlu1 %v1303_v15  ;;  %v1272_v5 = vpop.xlane.xlu2 %1271 }
 0xcd6   :  { %v1282_v10 = vmul.f32 %v1272_v5, %v2477_v0 }
 0xcd8   :  { %v3072_v32 = vsub.f32 %v1266_v55, %v1282_v10 }
 0xcda   :  { %v1290_v33 = vmul.f32 %v3072_v32, %v3072_v32 }
 0xcdc   :  { %v1294_v36 = vsel %vm117_vm4, %v1290_v33, 0.0 }
 0xcdd   :  { %1295 = vadd.xlane.f32.xlu1 %v1294_v36 }
 0xd37   :  { %v1299_v37 = vpop.xlane.xlu2 %1298 }
 0xd38   :  { %v1307_v6 = vmul.f32 %v1299_v37, %v2477_v0 }
 0xd3a   :  { %v1311_v38 = vadd.f32 1e-05, %v1307_v6 }
 0xd3c   :  { %2268 = vrsqrt.f32 %v1311_v38  ;;  %vm1330_vm0 = vweird.f32 %v1311_v38 }
 0xd40   :  { %v1302_v35 = vpop.xlane.xlu0 %1301 }
 0xd41   :  { %v1308_v39 = vmul.f32 %v1302_v35, %v2477_v0  ;;  %v3091_v35 = vld [vmem:[%s3404_s8 + $0x80] sm:$0xff] }
 0xd42   :  { %v2269_v43 = vpop.eup %2268 }
 0xd43   :  { %v1325_v44 = vmul.f32 %v2269_v43, %v1311_v38  ;;  %v1312_v48 = vadd.f32 1e-05, %v1308_v39  ;;  %vm1331_vm15 = vweird.f32 %v2269_v43  ;;  %v3096_v39 = vld [vmem:[%s3404_s8 + $0xa0] sm:$0xff] }
 0xd44   :  { %vm1332_vm1 = vmor %vm1330_vm0, %vm1331_vm15 }
 0xd45   :  { %v1326_v49 = vmul.f32 %v2269_v43, %v1325_v44  ;;  %2270 = vrsqrt.f32 %v1312_v48  ;;  %vm1340_vm6 = vweird.f32 %v1312_v48  ;;  %v3120_v44 = vld [vmem:[%s3404_s8 + $0x90] sm:$0xff] }
 0xd47   :  { %v1327_v42 = vmul.f32 0.5, %v1326_v49  ;;  %v3134_v49 = vld [vmem:[%s3404_s8 + $0x98] sm:$0xff] }
 0xd48   :  { %v1305_v51 = vpop.xlane.xlu1 %1304 }
 0xd49   :  { %v1328_v56 = vsub.f32 1.5, %v1327_v42  ;;  %v1309_v57 = vmul.f32 %v1305_v51, %v2477_v0  ;;  %v3139_v42 = vld [vmem:[%s3404_s8 + $0xb8] sm:$0xff] }
 0xd4a   :  { %v2171_v51 = vld [vmem:[%s3400_s4 + $0x1d8] sm:$0xff] }
 0xd4b   :  { %v2271_v58 = vpop.eup %2270  ;;  %v1329_v60 = vmul.f32 %v2269_v43, %v1328_v56  ;;  %v1313_v62 = vadd.f32 1e-05, %v1309_v57  ;;  %v2170_v56 = vld [vmem:[%s3400_s4 + $0x1d0] sm:$0xff]  ;;  %1530 = vmatpush.msra.mxu1 %v2171_v51 }
 0xd4c   :  { %v1335_v63 = vmul.f32 %v2271_v58, %v1312_v48  ;;  %vm1341_vm5 = vweird.f32 %v2271_v58  ;;  %v3125_v48 = vld [vmem:[%s3404_s8 + $0xb0] sm:$0xff] }
 0xd4d   :  { %v1333_v17 = vsel %vm1332_vm1, %v2269_v43, %v1329_v60  ;;  %2272 = vrsqrt.f32 %v1313_v62  ;;  %vm1342_vm7 = vmor %vm1340_vm6, %vm1341_vm5  ;;  %vm1350_vm9 = vweird.f32 %v1313_v62  ;;  %v3111_v43 = vld [vmem:[%s3404_s8 + $0xa8] sm:$0xff]  ;;  %1531 = vmatpush.msra.mxu1 %v2170_v56  ;;  %v2168_v60 = vld [vmem:[%s3400_s4 + $0x1c0] sm:$0xff] }
 0xd4e   :  { %v1336_v21 = vmul.f32 %v2271_v58, %v1335_v63  ;;  %v1355_v20 = vmul.f32 %v1333_v17, %v1287_v27  ;;  %v2166_v63 = vld [vmem:[%s3400_s4 + $0x1b0] sm:$0xff]  ;;  %v2165_v17 = vld [vmem:[%s3400_s4 + $0x1a8] sm:$0xff] }
 0xd50   :  { %v1337_v23 = vmul.f32 0.5, %v1336_v21  ;;  %v1296_v25 = vpop.xlane.xlu1 %1295  ;;  %v1360_v1 = vmul.f32 %v1358_v29, %v1355_v20  ;;  %v2164_v21 = vld [vmem:[%s3400_s4 + $0x1a0] sm:$0xff]  ;;  %v2163_v20 = vld [vmem:[%s3400_s4 + $0x198] sm:$0xff] }
 0xd51   :  { %v1306_v2 = vmul.f32 %v1296_v25, %v2477_v0  ;;  %v2161_v25 = vld [vmem:[%s3400_s4 + $0x188] sm:$0xff] }
 0xd52   :  { %v1338_v50 = vsub.f32 1.5, %v1337_v23  ;;  %v1365_v59 = vadd.f32 %v1363_v22, %v1360_v1 }
 0xd53   :  { %v2273_v3 = vpop.eup %2272  ;;  %v1310_v12 = vadd.f32 1e-05, %v1306_v2  ;;  %v2160_v2 = vld [vmem:[%s3400_s4 + $0x180] sm:$0xff] }
 0xd54   :  { %v1345_v55 = vmul.f32 %v2273_v3, %v1313_v62  ;;  %1466 = vrot.lane.b32.xlu1 %v1365_v59, %s2327_s18  ;;  %v1339_v13 = vmul.f32 %v2271_v58, %v1338_v50  ;;  %vm1351_vm8 = vweird.f32 %v2273_v3  ;;  %v2167_v62 = vld [vmem:[%s3400_s4 + $0x1b8] sm:$0xff] }
 0xd55   :  { %2274 = vrsqrt.f32 %v1310_v12  ;;  %vm1352_vm10 = vmor %vm1350_vm9, %vm1351_vm8  ;;  %vm1320_vm12 = vweird.f32 %v1310_v12 }
 0xd56   :  { %v1346_v18 = vmul.f32 %v2273_v3, %v1345_v55  ;;  %v1343_v27 = vsel %vm1342_vm7, %v2271_v58, %v1339_v13  ;;  %v2169_v58 = vld [vmem:[%s3400_s4 + $0x1c8] sm:$0xff] }
 0xd57   :  { %v1356_v4 = vmul.f32 %v1343_v27, %v3060_v19  ;;  %1532 = vmatpush.msra.mxu1 %v2169_v58 }
 0xd58   :  { %v1347_v26 = vmul.f32 0.5, %v1346_v18 }
 0xd59   :  { %v1361_v5 = vmul.f32 %v1358_v29, %v1356_v4  ;;  %1533 = vmatpush.msra.mxu1 %v2168_v60 }
 0xd5a   :  { %v1348_v28 = vsub.f32 1.5, %v1347_v26 }
 0xd5b   :  { %v2275_v61 = vpop.eup %2274  ;;  %v1366_v37 = vadd.f32 %v1363_v22, %v1361_v5  ;;  %1534 = vmatpush.msra.mxu1 %v2167_v62 }
 0xd5c   :  { %v1349_v30 = vmul.f32 %v2273_v3, %v1348_v28  ;;  %v1315_v41 = vmul.f32 %v2275_v61, %v1310_v12  ;;  %vm1321_vm11 = vweird.f32 %v2275_v61 }
 0xd5d   :  { %vm1322_vm13 = vmor %vm1320_vm12, %vm1321_vm11  ;;  %1535 = vmatpush.msra.mxu1 %v2166_v63 }
 0xd5e   :  { %v1353_v7 = vsel %vm1352_vm10, %v2273_v3, %v1349_v30  ;;  %v1316_v8 = vmul.f32 %v2275_v61, %v1315_v41 }
 0xd5f   :  { %v1357_v9 = vmul.f32 %v1353_v7, %v3066_v11  ;;  %1536 = vmatpush.msra.mxu1 %v2165_v17 }
 0xd60   :  { %v1317_v14 = vmul.f32 0.5, %v1316_v8 }
 0xd61   :  { %v1362_v15 = vmul.f32 %v1358_v29, %v1357_v9  ;;  %1537 = vmatpush.msra.mxu1 %v2164_v21 }
 0xd62   :  { %v1318_v10 = vsub.f32 1.5, %v1317_v14 }
 0xd63   :  { %v1367_v33 = vadd.f32 %v1363_v22, %v1362_v15  ;;  %1538 = vmatpush.msra.mxu1 %v2163_v20 }
 0xd64   :  { %v1319_v36 = vmul.f32 %v2275_v61, %v1318_v10 }
 0xd65   :  { %1397 = vmatpush.msrb.mxu3 %v1367_v33  ;;  %1443 = vmatpush.msrb.mxu0 %v1367_v33 }
 0xd66   :  { %v1323_v6 = vsel %vm1322_vm13, %v2275_v61, %v1319_v36  ;;  %1470 = vrot.lane.b32.xlu1 %v1367_v33, %s2327_s18  ;;  %v1513_v33 = vperm.slane %v3034_v47, 4 }
 0xd67   :  { %1398 = vmatpush.msrb.mxu3 %v1366_v37  ;;  %1444 = vmatpush.msrb.mxu0 %v1366_v37  ;;  %v1354_v19 = vmul.f32 %v1323_v6, %v3072_v32  ;;  %v3106_v32 = vld [vmem:[%s3404_s8 + $0x88] sm:$0xff] }
 0xd69   :  { %1399 = vmatpush.msrb.mxu3 %v1365_v59  ;;  %1445 = vmatpush.msrb.mxu0 %v1365_v59  ;;  %v1359_v11 = vmul.f32 %v1358_v29, %v1354_v19 }
 0xd6b   :  { %v1364_v38 = vadd.f32 %v1363_v22, %v1359_v11  ;;  %v2162_v22 = vld [vmem:[%s3400_s4 + $0x190] sm:$0xff] }
 0xd6c   :  { %1539 = vmatpush.msra.mxu1 %v2162_v22 }
 0xd6d   :  { %1464 = vrot.lane.b32.xlu0 %v1364_v38, %s2327_s18  ;;  %1400 = vmatpush.msrb.mxu3 %v1364_v38 }
 0xd6e   :  { %1446 = vmatpush.msrb.mxu0 %v1364_v38  ;;  %2148 = vmatmul.msk.f32.vlgmr.msrb.gmra.mxu3 %vm117_vm4, %v3091_v35 }
 0xd6f   :  { %2156 = vmatmul.msk.f32.vlgmr.msrb.gmra.mxu0 %vm117_vm4, %v3096_v39  ;;  %1540 = vmatpush.msra.mxu1 %v2161_v25 }
 0xd71   :  { %1541 = vmatpush.msra.mxu1 %v2160_v2 }
 0xd76   :  { %2149 = vmatmul.msk.f32.gmra.mxu3 %vm117_vm4, %v3106_v32 }
 0xd77   :  { %2157 = vmatmul.msk.f32.gmra.mxu0 %vm117_vm4, %v3111_v43 }
 0xd7e   :  { %2150 = vmatmul.msk.f32.gmra.mxu3 %vm117_vm4, %v3120_v44 }
 0xd7f   :  { %2158 = vmatmul.msk.f32.gmra.mxu0 %vm117_vm4, %v3125_v48 }
 0xd86   :  { %2151 = vmatmul.msk.f32.gmra.mxu3 %vm117_vm4, %v3134_v49 }
 0xd87   :  { %2159 = vmatmul.msk.f32.gmra.mxu0 %vm117_vm4, %v3139_v42 }
 0xdc6   :  { %v1467_v18 = vpop.permute.xlu1 %1466 }
 0xdd8   :  { %v1471_v14 = vpop.permute.xlu1 %1470 }
 0xddf   :  { %v1465_v59 = vpop.permute.xlu0 %1464 }
 0xdec   :  { %v1448_v57 = vpop.f32.mrf.mxu0 }
 0xded   :  { %1480 = vrot.lane.b32.xlu2 %v1448_v57, %s2328_s19 }
 0xdf1   :  { %v1402_v50 = vpop.f32.mrf.mxu3 }
 0xdf2   :  { %v1492_v3 = vsel %vm117_vm4, %v1402_v50, %v1465_v59 }
 0xdf4   :  { %v1451_v29 = vpop.f32.mrf.mxu0 }
 0xdf5   :  { %1468 = vrot.lane.b32.xlu2 %v1366_v37, %s2327_s18  ;;  %1482 = vrot.lane.b32.xlu0 %v1451_v29, %s2328_s19 }
 0xdf9   :  { %v1405_v13 = vpop.f32.mrf.mxu3 }
 0xdfa   :  { %v1493_v26 = vsel %vm117_vm4, %v1405_v13, %v1467_v18 }
 0xdfc   :  { %v1454_v23 = vpop.f32.mrf.mxu0 }
 0xdfd   :  { %1484 = vrot.lane.b32.xlu0 %v1454_v23, %s2328_s19 }
 0xe01   :  { %v1408_v61 = vpop.f32.mrf.mxu3 }
 0xe04   :  { %v1457_v1 = vpop.f32.mrf.mxu0 }
 0xe05   :  { %1486 = vrot.lane.b32.xlu2 %v1457_v1, %s2328_s19 }
 0xe09   :  { %v1411_v8 = vpop.f32.mrf.mxu3 }
 0xe0a   :  { %v1495_v15 = vsel %vm117_vm4, %v1411_v8, %v1471_v14 }
 0xe47   :  { %v1481_v12 = vpop.permute.xlu2 %1480 }
 0xe48   :  { %v1496_v55 = vsel %vm399_vm3, %v1492_v3, %v1481_v12 }
 0xe49   :  { %2172 = vmatmul.msk.f32.vlgmr.msra.gmra.mxu1 %vm417_vm2, %v1496_v55 }
 0xe4f   :  { %v1469_v30 = vpop.permute.xlu2 %1468 }
 0xe50   :  { %v1494_v41 = vsel %vm117_vm4, %v1408_v61, %v1469_v30 }
 0xe5f   :  { %v1487_v9 = vpop.permute.xlu2 %1486 }
 0xe60   :  { %v1499_v5 = vsel %vm399_vm3, %v1495_v15, %v1487_v9 }
 0xe67   :  { %v1483_v27 = vpop.permute.xlu0 %1482 }
 0xe68   :  { %v1497_v28 = vsel %vm399_vm3, %v1493_v26, %v1483_v27 }
 0xe69   :  { %2173 = vmatmul.msk.f32.gmra.mxu1 %vm417_vm2, %v1497_v28 }
 0xe6f   :  { %v1485_v4 = vpop.permute.xlu0 %1484 }
 0xe70   :  { %v1498_v7 = vsel %vm399_vm3, %v1494_v41, %v1485_v4 }
 0xe71   :  { %2174 = vmatmul.msk.f32.gmra.mxu1 %vm417_vm2, %v1498_v7 }
 0xe79   :  { %2175 = vmatmul.msk.f32.gmra.mxu1 %vm417_vm2, %v1499_v5 }
 0xec6   :  { %v1543_v10 = vpop.f32.mrf.mxu1 }
 0xec7   :  { %v1544_v62 = vadd.f32 %v1543_v10, %v1513_v33 }
 0xec9   :  { %v1555_v29 = vmax.f32 %v1544_v62, 0.0 }
 0xecb   :  { %v1559_v17 = vsel %vm117_vm4, %v1555_v29, 0.0 }
 0xee6   :  { %v1546_v36 = vpop.f32.mrf.mxu1 }
 0xee7   :  { %v1547_v37 = vadd.f32 %v1546_v36, %v1513_v33 }
 0xee9   :  { %v1556_v6 = vmax.f32 %v1547_v37, 0.0 }
 0xeeb   :  { %v1562_v19 = vsel %vm117_vm4, %v1556_v6, 0.0 }
 0xeec   :  { %1563 = vadd.xlane.f32.xlu2 %v1562_v19 }
 0xeee   :  { %v1549_v11 = vpop.f32.mrf.mxu1 }
 0xeef   :  { %v1550_v38 = vadd.f32 %v1549_v11, %v1513_v33 }
 0xef1   :  { %v1557_v51 = vmax.f32 %v1550_v38, 0.0 }
 0xef3   :  { %v1565_v56 = vsel %vm117_vm4, %v1557_v51, 0.0 }
 0xef4   :  { %1566 = vadd.xlane.f32.xlu1 %v1565_v56 }
 0xef6   :  { %v1552_v57 = vpop.f32.mrf.mxu1 }
 0xef7   :  { %v1553_v58 = vadd.f32 %v1552_v57, %v1513_v33  ;;  %v1647_v57 = vperm.slane %v2946_v53, 5 }
 0xef9   :  { %v1558_v60 = vmax.f32 %v1553_v58, 0.0 }
 0xefb   :  { %v1568_v63 = vsel %vm117_vm4, %v1558_v60, 0.0 }
 0xefc   :  { %1569 = vadd.xlane.f32.xlu0 %v1568_v63  ;;  %v1652_v63 = vperm.slane %v2952_v34, 5 }
 0xf04   :  { %1560 = vadd.xlane.f32.xlu0 %v1559_v17 }
 0xf5f   :  { %v1564_v21 = vpop.xlane.xlu2 %1563 }
 0xf60   :  { %v1572_v20 = vmul.f32 %v1564_v21, %v2477_v0 }
 0xf62   :  { %v1576_v22 = vsub.f32 %v1556_v6, %v1572_v20 }
 0xf64   :  { %v1580_v23 = vmul.f32 %v1576_v22, %v1576_v22 }
 0xf66   :  { %v1586_v25 = vsel %vm117_vm4, %v1580_v23, 0.0 }
 0xf67   :  { %1587 = vadd.xlane.f32.xlu0 %v1586_v25  ;;  %v1567_v1 = vpop.xlane.xlu1 %1566 }
 0xf68   :  { %v1573_v2 = vmul.f32 %v1567_v1, %v2477_v0 }
 0xf6a   :  { %v3206_v50 = vsub.f32 %v1557_v51, %v1573_v2 }
 0xf6c   :  { %v1581_v59 = vmul.f32 %v3206_v50, %v3206_v50 }
 0xf6e   :  { %v1589_v3 = vsel %vm117_vm4, %v1581_v59, 0.0 }
 0xf6f   :  { %v1570_v12 = vpop.xlane.xlu0 %1569  ;;  %1590 = vadd.xlane.f32.xlu2 %v1589_v3 }
 0xf70   :  { %v1574_v55 = vmul.f32 %v1570_v12, %v2477_v0 }
 0xf72   :  { %v3212_v13 = vsub.f32 %v1558_v60, %v1574_v55 }
 0xf74   :  { %v1582_v18 = vmul.f32 %v3212_v13, %v3212_v13 }
 0xf76   :  { %v1592_v26 = vsel %vm117_vm4, %v1582_v18, 0.0 }
 0xf77   :  { %v1561_v27 = vpop.xlane.xlu0 %1560  ;;  %1593 = vadd.xlane.f32.xlu1 %v1592_v26 }
 0xf78   :  { %v1571_v28 = vmul.f32 %v1561_v27, %v2477_v0 }
 0xf7a   :  { %v3218_v61 = vsub.f32 %v1555_v29, %v1571_v28 }
 0xf7c   :  { %v1579_v30 = vmul.f32 %v3218_v61, %v3218_v61 }
 0xf7e   :  { %v1583_v41 = vsel %vm117_vm4, %v1579_v30, 0.0 }
 0xf7f   :  { %1584 = vadd.xlane.f32.xlu1 %v1583_v41 }
 0xfda   :  { %v1588_v4 = vpop.xlane.xlu0 %1587 }
 0xfdb   :  { %v1596_v7 = vmul.f32 %v1588_v4, %v2477_v0 }
 0xfdd   :  { %v1600_v8 = vadd.f32 1e-05, %v1596_v7 }
 0xfdf   :  { %2276 = vrsqrt.f32 %v1600_v8  ;;  %vm1619_vm15 = vweird.f32 %v1600_v8 }
 0xfe2   :  { %v1591_v9 = vpop.xlane.xlu2 %1590 }
 0xfe3   :  { %v1597_v14 = vmul.f32 %v1591_v9, %v2477_v0 }
 0xfe5   :  { %v2277_v15 = vpop.eup %2276  ;;  %v1601_v5 = vadd.f32 1e-05, %v1597_v14 }
 0xfe6   :  { %v1614_v10 = vmul.f32 %v2277_v15, %v1600_v8  ;;  %vm1620_vm14 = vweird.f32 %v2277_v15 }
 0xfe7   :  { %2278 = vrsqrt.f32 %v1601_v5  ;;  %vm1621_vm0 = vmor %vm1619_vm15, %vm1620_vm14  ;;  %vm1629_vm5 = vweird.f32 %v1601_v5 }
 0xfe8   :  { %v1615_v33 = vmul.f32 %v2277_v15, %v1614_v10 }
 0xfea   :  { %v1616_v36 = vmul.f32 0.5, %v1615_v33  ;;  %v1594_v37 = vpop.xlane.xlu1 %1593 }
 0xfeb   :  { %v1598_v6 = vmul.f32 %v1594_v37, %v2477_v0 }
 0xfec   :  { %v1617_v19 = vsub.f32 1.5, %v1616_v36  ;;  %v2187_v36 = vld [vmem:[%s3400_s4 + $0x1f8] sm:$0xff] }
 0xfed   :  { %v2279_v11 = vpop.eup %2278  ;;  %v1602_v38 = vadd.f32 1e-05, %v1598_v6  ;;  %v2186_v6 = vld [vmem:[%s3400_s4 + $0x1f0] sm:$0xff] }
 0xfee   :  { %v1618_v51 = vmul.f32 %v2277_v15, %v1617_v19  ;;  %v1624_v56 = vmul.f32 %v2279_v11, %v1601_v5  ;;  %vm1630_vm1 = vweird.f32 %v2279_v11  ;;  %v2185_v19 = vld [vmem:[%s3400_s4 + $0x1e8] sm:$0xff] }
 0xfef   :  { %2280 = vrsqrt.f32 %v1602_v38  ;;  %vm1631_vm6 = vmor %vm1629_vm5, %vm1630_vm1  ;;  %vm1639_vm8 = vweird.f32 %v1602_v38 }
 0xff0   :  { %v1622_v58 = vsel %vm1621_vm0, %v2277_v15, %v1618_v51  ;;  %v1625_v60 = vmul.f32 %v2279_v11, %v1624_v56  ;;  %v2184_v51 = vld [vmem:[%s3400_s4 + $0x1e0] sm:$0xff] }
 0xff1   :  { %v1644_v62 = vmul.f32 %v1622_v58, %v1576_v22 }
 0xff2   :  { %v1626_v29 = vmul.f32 0.5, %v1625_v60  ;;  %v1585_v17 = vpop.xlane.xlu1 %1584 }
 0xff3   :  { %v1595_v21 = vmul.f32 %v1585_v17, %v2477_v0  ;;  %v1649_v20 = vmul.f32 %v1647_v57, %v1644_v62 }
 0xff4   :  { %v1627_v23 = vsub.f32 1.5, %v1626_v29 }
 0xff5   :  { %v2281_v25 = vpop.eup %2280  ;;  %v1599_v1 = vadd.f32 1e-05, %v1595_v21  ;;  %v1654_v2 = vadd.f32 %v1652_v63, %v1649_v20 }
 0xff6   :  { %v1634_v59 = vmul.f32 %v2281_v25, %v1602_v38  ;;  %v1628_v3 = vmul.f32 %v2279_v11, %v1627_v23  ;;  %vm1640_vm7 = vweird.f32 %v2281_v25 }
 0xff7   :  { %2282 = vrsqrt.f32 %v1599_v1  ;;  %1721 = vrot.lane.b32.xlu1 %v1654_v2, %s2327_s18  ;;  %vm1641_vm9 = vmor %vm1639_vm8, %vm1640_vm7  ;;  %vm1609_vm11 = vweird.f32 %v1599_v1 }
 0xff8   :  { %v1635_v53 = vmul.f32 %v2281_v25, %v1634_v59  ;;  %v1632_v34 = vsel %vm1631_vm6, %v2279_v11, %v1628_v3 }
 0xff9   :  { %v1645_v27 = vmul.f32 %v1632_v34, %v3206_v50 }
 0xffa   :  { %v1636_v22 = vmul.f32 0.5, %v1635_v53 }
 0xffb   :  { %v1650_v8 = vmul.f32 %v1647_v57, %v1645_v27  ;;  %v2200_v27 = vld [vmem:[%s3398_s2 + $0x20] sm:$0xff] }
 0xffc   :  { %v1637_v12 = vsub.f32 1.5, %v1636_v22 }
 0xffd   :  { %v2283_v55 = vpop.eup %2282  ;;  %v1655_v5 = vadd.f32 %v1652_v63, %v1650_v8 }
 0xffe   :  { %v1638_v18 = vmul.f32 %v2281_v25, %v1637_v12  ;;  %v1604_v26 = vmul.f32 %v2283_v55, %v1599_v1  ;;  %vm1610_vm10 = vweird.f32 %v2283_v55 }
 0xfff   :  { %vm1611_vm12 = vmor %vm1609_vm11, %vm1610_vm10 }
0x1000   :  { %v1642_v28 = vsel %vm1641_vm9, %v2281_v25, %v1638_v18  ;;  %v1605_v30 = vmul.f32 %v2283_v55, %v1604_v26  ;;  %v2202_v18 = vld [vmem:[%s3398_s2 + $0x30] sm:$0xff]  ;;  %v2201_v26 = vld [vmem:[%s3398_s2 + $0x28] sm:$0xff] }
0x1001   :  { %v1646_v41 = vmul.f32 %v1642_v28, %v3212_v13  ;;  %v1768_v28 = vperm.slane %v3034_v47, 5 }
0x1002   :  { %v1606_v4 = vmul.f32 0.5, %v1605_v30 }
0x1003   :  { %v1651_v7 = vmul.f32 %v1647_v57, %v1646_v41 }
0x1004   :  { %v1607_v9 = vsub.f32 1.5, %v1606_v4 }
0x1005   :  { %v1656_v14 = vadd.f32 %v1652_v63, %v1651_v7 }
0x1006   :  { %v1608_v15 = vmul.f32 %v2283_v55, %v1607_v9 }
0x1007   :  { %1669 = vmatpush.msra.mxu2 %v1656_v14  ;;  %1698 = vmatpush.msra.mxu3 %v1656_v14 }
0x1008   :  { %v1612_v10 = vsel %vm1611_vm12, %v2283_v55, %v1608_v15 }
0x1009   :  { %1670 = vmatpush.msra.mxu2 %v1655_v5  ;;  %1699 = vmatpush.msra.mxu3 %v1655_v5  ;;  %v1643_v50 = vmul.f32 %v1612_v10, %v3218_v61  ;;  %v2188_v61 = vld [vmem:[%s3400_s4 + $0x200] sm:$0xff] }
0x100b   :  { %1671 = vmatpush.msra.mxu2 %v1654_v2  ;;  %1700 = vmatpush.msra.mxu3 %v1654_v2  ;;  %v1648_v13 = vmul.f32 %v1647_v57, %v1643_v50  ;;  %v2203_v57 = vld [vmem:[%s3398_s2 + $0x38] sm:$0xff] }
0x100c   :  { %1844 = vmatpush.msrb.mxu1 %v2203_v57 }
0x100d   :  { %v1653_v33 = vadd.f32 %v1652_v63, %v1648_v13 }
0x100e   :  { %1845 = vmatpush.msrb.mxu1 %v2202_v18 }
0x100f   :  { %1719 = vrot.lane.b32.xlu2 %v1653_v33, %s2327_s18  ;;  %1672 = vmatpush.msra.mxu2 %v1653_v33 }
0x1010   :  { %1701 = vmatpush.msra.mxu3 %v1653_v33  ;;  %2176 = vmatmul.msk.f32.vlgmr.msra.gmra.mxu2 %vm117_vm4, %v3091_v35  ;;  %v2195_v35 = vld [vmem:[%s3400_s4 + $0x238] sm:$0xff] }
0x1011   :  { %2180 = vmatmul.msk.f32.vlgmr.msra.gmra.mxu3 %vm117_vm4, %v3096_v39  ;;  %v2194_v39 = vld [vmem:[%s3400_s4 + $0x230] sm:$0xff]  ;;  %1785 = vmatpush.msra.mxu0 %v2195_v35 }
0x1012   :  { %1846 = vmatpush.msrb.mxu1 %v2201_v26 }
0x1013   :  { %1786 = vmatpush.msra.mxu0 %v2194_v39 }
0x1014   :  { %1847 = vmatpush.msrb.mxu1 %v2200_v27 }
0x1017   :  { %1723 = vrot.lane.b32.xlu2 %v1655_v5, %s2327_s18 }
0x1018   :  { %2177 = vmatmul.msk.f32.gmra.mxu2 %vm117_vm4, %v3106_v32  ;;  %v2193_v32 = vld [vmem:[%s3400_s4 + $0x228] sm:$0xff] }
0x1019   :  { %2181 = vmatmul.msk.f32.gmra.mxu3 %vm117_vm4, %v3111_v43  ;;  %v2192_v43 = vld [vmem:[%s3400_s4 + $0x220] sm:$0xff]  ;;  %1787 = vmatpush.msra.mxu0 %v2193_v32 }
0x101b   :  { %1788 = vmatpush.msra.mxu0 %v2192_v43 }
0x1020   :  { %2178 = vmatmul.msk.f32.gmra.mxu2 %vm117_vm4, %v3120_v44  ;;  %v2191_v44 = vld [vmem:[%s3400_s4 + $0x218] sm:$0xff] }
0x1021   :  { %2182 = vmatmul.msk.f32.gmra.mxu3 %vm117_vm4, %v3125_v48  ;;  %1789 = vmatpush.msra.mxu0 %v2191_v44 }
0x1028   :  { %2179 = vmatmul.msk.f32.gmra.mxu2 %vm117_vm4, %v3134_v49  ;;  %v2190_v49 = vld [vmem:[%s3400_s4 + $0x210] sm:$0xff] }
0x1029   :  { %2183 = vmatmul.msk.f32.gmra.mxu3 %vm117_vm4, %v3139_v42  ;;  %v2189_v42 = vld [vmem:[%s3400_s4 + $0x208] sm:$0xff]  ;;  %1790 = vmatpush.msra.mxu0 %v2190_v49 }
0x102b   :  { %1791 = vmatpush.msra.mxu0 %v2189_v42 }
0x102d   :  { %1792 = vmatpush.msra.mxu0 %v2188_v61 }
0x102f   :  { %1793 = vmatpush.msra.mxu0 %v2187_v36 }
0x1031   :  { %1794 = vmatpush.msra.mxu0 %v2186_v6 }
0x1033   :  { %1795 = vmatpush.msra.mxu0 %v2185_v19 }
0x1035   :  { %1796 = vmatpush.msra.mxu0 %v2184_v51 }
0x1069   :  { %v1720_v58 = vpop.permute.xlu2 %1719  ;;  %v1722_v17 = vpop.permute.xlu1 %1721 }
0x1071   :  { %v1724_v1 = vpop.permute.xlu2 %1723 }
0x1093   :  { %v1674_v56 = vpop.f32.mrf.mxu2 }
0x1094   :  { %v1703_v48 = vpop.f32.mrf.mxu3  ;;  %v1747_v60 = vsel %vm117_vm4, %v1674_v56, %v1720_v58 }
0x1095   :  { %1735 = vrot.lane.b32.xlu0 %v1703_v48, %s2328_s19 }
0x109b   :  { %v1677_v63 = vpop.f32.mrf.mxu2 }
0x109c   :  { %v1706_v37 = vpop.f32.mrf.mxu3  ;;  %v1748_v21 = vsel %vm117_vm4, %v1677_v63, %v1722_v17 }
0x109d   :  { %1737 = vrot.lane.b32.xlu0 %v1706_v37, %s2328_s19 }
0x10a3   :  { %v1680_v25 = vpop.f32.mrf.mxu2 }
0x10a4   :  { %v1709_v11 = vpop.f32.mrf.mxu3  ;;  %v1749_v2 = vsel %vm117_vm4, %v1680_v25, %v1724_v1 }
0x10a5   :  { %1725 = vrot.lane.b32.xlu0 %v1656_v14, %s2327_s18  ;;  %1739 = vrot.lane.b32.xlu1 %v1709_v11, %s2328_s19 }
0x10ab   :  { %v1683_v22 = vpop.f32.mrf.mxu2 }
0x10ac   :  { %v1712_v38 = vpop.f32.mrf.mxu3 }
0x10ad   :  { %1741 = vrot.lane.b32.xlu2 %v1712_v38, %s2328_s19 }
0x1107   :  { %v1736_v62 = vpop.permute.xlu0 %1735  ;;  %v1742_v12 = vpop.permute.xlu2 %1741 }
0x1108   :  { %v1751_v29 = vsel %vm399_vm3, %v1747_v60, %v1736_v62 }
0x1109   :  { %2196 = vmatmul.msk.f32.vlgmr.msra.gmra.mxu0 %vm417_vm2, %v1751_v29 }
0x110f   :  { %v1738_v20 = vpop.permute.xlu0 %1737 }
0x1110   :  { %v1752_v23 = vsel %vm399_vm3, %v1748_v21, %v1738_v20 }
0x1111   :  { %2197 = vmatmul.msk.f32.gmra.mxu0 %vm417_vm2, %v1752_v23 }
0x1117   :  { %v1740_v59 = vpop.permute.xlu1 %1739  ;;  %v1726_v53 = vpop.permute.xlu0 %1725 }
0x1118   :  { %v1753_v3 = vsel %vm399_vm3, %v1749_v2, %v1740_v59  ;;  %v1750_v34 = vsel %vm117_vm4, %v1683_v22, %v1726_v53  ;;  %v2211_v53 = vld [vmem:[%s3398_s2 + $0x58] sm:$0xff]  ;;  %v2210_v22 = vld [vmem:[%s3398_s2 + $0x50] sm:$0xff] }
0x1119   :  { %2198 = vmatmul.msk.f32.gmra.mxu0 %vm417_vm2, %v1753_v3  ;;  %v1754_v55 = vsel %vm399_vm3, %v1750_v34, %v1742_v12  ;;  %1997 = vmatpush.msrb.mxu2 %v2211_v53  ;;  %v2209_v34 = vld [vmem:[%s3398_s2 + $0x48] sm:$0xff]  ;;  %v2208_v12 = vld [vmem:[%s3398_s2 + $0x40] sm:$0xff] }
0x111b   :  { %1998 = vmatpush.msrb.mxu2 %v2210_v22 }
0x111d   :  { %1999 = vmatpush.msrb.mxu2 %v2209_v34 }
0x111f   :  { %2000 = vmatpush.msrb.mxu2 %v2208_v12 }
0x1121   :  { %2199 = vmatmul.msk.f32.gmra.mxu0 %vm417_vm2, %v1754_v55 }
0x1186   :  { %v1798_v30 = vpop.f32.mrf.mxu0 }
0x1187   :  { %v1799_v41 = vadd.f32 %v1798_v30, %v1768_v28 }
0x1189   :  { %v1810_v4 = vadd.f32 %v1799_v41, %v3052_v16  ;;  %v3328_v16 = vld [vmem:[%s3399_s3] sm:$0x7] }
0x118b   :  { %2204 = vmatmul.msk.f32.vlgmr.msrb.gmra.mxu1 %vm117_vm4, %v1810_v4 }
0x118e   :  { %v1801_v7 = vpop.f32.mrf.mxu0 }
0x118f   :  { %v1802_v8 = vadd.f32 %v1801_v7, %v1768_v28 }
0x1191   :  { %v1811_v9 = vadd.f32 %v1802_v8, %v3038_v31  ;;  %v1819_v31 = vperm.slane %v3328_v16, 1 }
0x1193   :  { %2205 = vmatmul.msk.f32.gmra.mxu1 %vm117_vm4, %v1811_v9 }
0x1196   :  { %v1804_v14 = vpop.f32.mrf.mxu0 }
0x1197   :  { %v1805_v15 = vadd.f32 %v1804_v14, %v1768_v28 }
0x1199   :  { %v1812_v5 = vadd.f32 %v1805_v15, %v3043_v24 }
0x119b   :  { %2206 = vmatmul.msk.f32.gmra.mxu1 %vm117_vm4, %v1812_v5 }
0x119e   :  { %v1807_v10 = vpop.f32.mrf.mxu0 }
0x119f   :  { %v1808_v47 = vadd.f32 %v1807_v10, %v1768_v28 }
0x11a1   :  { %v1813_v50 = vadd.f32 %v1808_v47, %v3048_v46 }
0x11a3   :  { %2207 = vmatmul.msk.f32.gmra.mxu1 %vm117_vm4, %v1813_v50 }
0x1208   :  { %v1849_v13 = vpop.f32.mrf.mxu1 }
0x1209   :  { %v1850_v33 = vadd.f32 %v1849_v13, %v1819_v31 }
0x120b   :  { %v1861_v35 = vadd.f32 %v1850_v33, %v2461_v40 }
0x120d   :  { %v1865_v24 = vmax.f32 %v1861_v35, 0.0 }
0x120f   :  { %v1869_v39 = vsel %vm117_vm4, %v1865_v24, 0.0 }
0x1210   :  { %1870 = vadd.xlane.f32.xlu1 %v1869_v39  ;;  %v1852_v32 = vpop.f32.mrf.mxu1  ;;  %v2297_v39 = vld [vmem:[%s3403_s7] sm:$0x7f] }
0x1211   :  { %v1853_v43 = vadd.f32 %v1852_v32, %v1819_v31  ;;  %v1962_v32 = vperm.slane %v2297_v39, 6 }
0x1213   :  { %v1862_v46 = vadd.f32 %v1853_v43, %v2465_v45 }
0x1215   :  { %v1866_v44 = vmax.f32 %v1862_v46, 0.0 }
0x1217   :  { %v1872_v48 = vsel %vm117_vm4, %v1866_v44, 0.0 }
0x1218   :  { %1873 = vadd.xlane.f32.xlu0 %v1872_v48  ;;  %v1855_v49 = vpop.f32.mrf.mxu1 }
0x1219   :  { %v1856_v42 = vadd.f32 %v1855_v49, %v1819_v31 }
0x121b   :  { %v1863_v61 = vadd.f32 %v1856_v42, %v2472_v54 }
0x121d   :  { %v1867_v36 = vmax.f32 %v1863_v61, 0.0 }
0x121f   :  { %v1875_v37 = vsel %vm117_vm4, %v1867_v36, 0.0 }
0x1220   :  { %v1858_v40 = vpop.f32.mrf.mxu1  ;;  %1876 = vadd.xlane.f32.xlu2 %v1875_v37 }
0x1221   :  { %v1859_v6 = vadd.f32 %v1858_v40, %v1819_v31  ;;  %v2296_v31 = vld [vmem:[%s3402_s6] sm:$0x7f]  ;;  %s2329_s6 = smov [#allocation2]  }
0x1222   :  { %v1957_v13 = vperm.slane %v2296_v31, 6  ;;  %s2022_s7 = sshll.u32 %s2329_s6, 4  ;;  %s2023_s7 = int_to_ptr.vmem [resolvable:$true] %s2022_s7 }
0x1223   :  { %v1864_v19 = vadd.f32 %v1859_v6, %v2469_v52 }
0x1225   :  { %v1868_v11 = vmax.f32 %v1864_v19, 0.0 }
0x1227   :  { %v1878_v38 = vsel %vm117_vm4, %v1868_v11, 0.0 }
0x1228   :  { %1879 = vadd.xlane.f32.xlu1 %v1878_v38 }
0x1283   :  { %v1871_v45 = vpop.xlane.xlu1 %1870 }
0x1284   :  { %v1881_v51 = vmul.f32 %v1871_v45, %v2477_v0 }
0x1286   :  { %v1885_v56 = vsub.f32 %v1865_v24, %v1881_v51 }
0x1288   :  { %v1889_v57 = vmul.f32 %v1885_v56, %v1885_v56 }
0x128a   :  { %v1893_v58 = vsel %vm117_vm4, %v1889_v57, 0.0 }
0x128b   :  { %v1874_v54 = vpop.xlane.xlu0 %1873  ;;  %1894 = vadd.xlane.f32.xlu0 %v1893_v58 }
0x128c   :  { %v1882_v60 = vmul.f32 %v1874_v54, %v2477_v0 }
0x128e   :  { %v3342_v62 = vsub.f32 %v1866_v44, %v1882_v60 }
0x1290   :  { %v1890_v52 = vmul.f32 %v3342_v62, %v3342_v62 }
0x1292   :  { %v1896_v63 = vsel %vm117_vm4, %v1890_v52, 0.0 }
0x1293   :  { %1897 = vadd.xlane.f32.xlu2 %v1896_v63  ;;  %v1877_v29 = vpop.xlane.xlu2 %1876 }
0x1294   :  { %v1883_v17 = vmul.f32 %v1877_v29, %v2477_v0 }
0x1296   :  { %v3348_v21 = vsub.f32 %v1867_v36, %v1883_v17 }
0x1298   :  { %v1891_v20 = vmul.f32 %v3348_v21, %v3348_v21 }
0x129a   :  { %v1899_v23 = vsel %vm117_vm4, %v1891_v20, 0.0 }
0x129b   :  { %1900 = vadd.xlane.f32.xlu1 %v1899_v23  ;;  %v1880_v25 = vpop.xlane.xlu1 %1879 }
0x129c   :  { %v1884_v1 = vmul.f32 %v1880_v25, %v2477_v0 }
0x129e   :  { %v3354_v2 = vsub.f32 %v1868_v11, %v1884_v1 }
0x12a0   :  { %v1892_v59 = vmul.f32 %v3354_v2, %v3354_v2 }
0x12a2   :  { %v1902_v3 = vsel %vm117_vm4, %v1892_v59, 0.0 }
0x12a3   :  { %1903 = vadd.xlane.f32.xlu0 %v1902_v3  ;;  %v1972_v3 = vperm.slane %v3328_v16, 2 }
0x12fe   :  { %v1895_v55 = vpop.xlane.xlu0 %1894 }
0x12ff   :  { %v1905_v18 = vmul.f32 %v1895_v55, %v2477_v0 }
0x1301   :  { %v1909_v26 = vadd.f32 1e-05, %v1905_v18 }
0x1303   :  { %2284 = vrsqrt.f32 %v1909_v26  ;;  %vm1919_vm3 = vweird.f32 %v1909_v26 }
0x1306   :  { %v1898_v27 = vpop.xlane.xlu2 %1897 }
0x1307   :  { %v1906_v28 = vmul.f32 %v1898_v27, %v2477_v0 }
0x1309   :  { %v2285_v30 = vpop.eup %2284  ;;  %v1910_v41 = vadd.f32 1e-05, %v1906_v28 }
0x130a   :  { %v1914_v4 = vmul.f32 %v2285_v30, %v1909_v26  ;;  %vm1920_vm2 = vweird.f32 %v2285_v30 }
0x130b   :  { %2286 = vrsqrt.f32 %v1910_v41  ;;  %vm1921_vm13 = vmor %vm1919_vm3, %vm1920_vm2  ;;  %vm1929_vm15 = vweird.f32 %v1910_v41 }
0x130c   :  { %v1915_v7 = vmul.f32 %v2285_v30, %v1914_v4 }
0x130e   :  { %v1916_v8 = vmul.f32 0.5, %v1915_v7  ;;  %v1901_v9 = vpop.xlane.xlu1 %1900 }
0x130f   :  { %v1907_v14 = vmul.f32 %v1901_v9, %v2477_v0 }
0x1310   :  { %v1917_v15 = vsub.f32 1.5, %v1916_v8 }
0x1311   :  { %v2287_v5 = vpop.eup %2286  ;;  %v1911_v10 = vadd.f32 1e-05, %v1907_v14 }
0x1312   :  { %v1918_v47 = vmul.f32 %v2285_v30, %v1917_v15  ;;  %v1924_v50 = vmul.f32 %v2287_v5, %v1910_v41  ;;  %vm1930_vm14 = vweird.f32 %v2287_v5 }
0x1313   :  { %2288 = vrsqrt.f32 %v1911_v10  ;;  %vm1931_vm0 = vmor %vm1929_vm15, %vm1930_vm14  ;;  %vm1939_vm5 = vweird.f32 %v1911_v10 }
0x1314   :  { %v1922_v33 = vsel %vm1921_vm13, %v2285_v30, %v1918_v47  ;;  %v1925_v35 = vmul.f32 %v2287_v5, %v1924_v50 }
0x1315   :  { %v1953_v24 = vmul.f32 %v1922_v33, %v1885_v56 }
0x1316   :  { %v1926_v43 = vmul.f32 0.5, %v1925_v35  ;;  %v1904_v46 = vpop.xlane.xlu0 %1903 }
0x1317   :  { %v1958_v44 = vmul.f32 %v1957_v13, %v1953_v24  ;;  %v1908_v48 = vmul.f32 %v1904_v46, %v2477_v0 }
0x1318   :  { %v1927_v49 = vsub.f32 1.5, %v1926_v43 }
0x1319   :  { %v2289_v42 = vpop.eup %2288  ;;  %v1912_v61 = vadd.f32 1e-05, %v1908_v48  ;;  %v1963_v36 = vadd.f32 %v1962_v32, %v1958_v44 }
0x131a   :  { %v1928_v37 = vmul.f32 %v2287_v5, %v1927_v49  ;;  %v1934_v40 = vmul.f32 %v2289_v42, %v1911_v10  ;;  %vm1940_vm1 = vweird.f32 %v2289_v42 }
0x131b   :  { %2290 = vrsqrt.f32 %v1912_v61  ;;  %2212 = vmatmul.msk.f32.vlgmr.msrb.gmra.mxu2 %vm117_vm4, %v1963_v36  ;;  %vm1941_vm6 = vmor %vm1939_vm5, %vm1940_vm1  ;;  %vm1949_vm8 = vweird.f32 %v1912_v61 }
0x131c   :  { %v1932_v6 = vsel %vm1931_vm0, %v2287_v5, %v1928_v37  ;;  %v1935_v19 = vmul.f32 %v2289_v42, %v1934_v40 }
0x131d   :  { %v1954_v11 = vmul.f32 %v1932_v6, %v3342_v62 }
0x131e   :  { %v1936_v38 = vmul.f32 0.5, %v1935_v19 }
0x131f   :  { %v1959_v45 = vmul.f32 %v1957_v13, %v1954_v11 }
0x1320   :  { %v1937_v51 = vsub.f32 1.5, %v1936_v38 }
0x1321   :  { %v2291_v0 = vpop.eup %2290  ;;  %v1964_v56 = vadd.f32 %v1962_v32, %v1959_v45 }
0x1322   :  { %v1938_v57 = vmul.f32 %v2289_v42, %v1937_v51  ;;  %v1944_v58 = vmul.f32 %v2291_v0, %v1912_v61  ;;  %vm1950_vm7 = vweird.f32 %v2291_v0 }
0x1323   :  { %2213 = vmatmul.msk.f32.gmra.mxu2 %vm117_vm4, %v1964_v56  ;;  %vm1951_vm9 = vmor %vm1949_vm8, %vm1950_vm7 }
0x1324   :  { %v1942_v54 = vsel %vm1941_vm6, %v2289_v42, %v1938_v57  ;;  %v1945_v60 = vmul.f32 %v2291_v0, %v1944_v58 }
0x1325   :  { %v1955_v52 = vmul.f32 %v1942_v54, %v3348_v21 }
0x1326   :  { %v1946_v63 = vmul.f32 0.5, %v1945_v60 }
0x1327   :  { %v1960_v29 = vmul.f32 %v1957_v13, %v1955_v52 }
0x1328   :  { %v1947_v17 = vsub.f32 1.5, %v1946_v63 }
0x1329   :  { %v1965_v62 = vadd.f32 %v1962_v32, %v1960_v29 }
0x132a   :  { %v1948_v20 = vmul.f32 %v2291_v0, %v1947_v17 }
0x132b   :  { %2214 = vmatmul.msk.f32.gmra.mxu2 %vm117_vm4, %v1965_v62 }
0x132c   :  { %v1952_v23 = vsel %vm1951_vm9, %v2291_v0, %v1948_v20 }
0x132d   :  { %v1956_v25 = vmul.f32 %v1952_v23, %v3354_v2 }
0x132f   :  { %v1961_v1 = vmul.f32 %v1957_v13, %v1956_v25 }
0x1331   :  { %v1966_v59 = vadd.f32 %v1962_v32, %v1961_v1 }
0x1333   :  { %2215 = vmatmul.msk.f32.gmra.mxu2 %vm117_vm4, %v1966_v59 }
0x139e   :  { %v2002_v21 = vpop.f32.mrf.mxu2 }
0x139f   :  { %v2003_v53 = vadd.f32 %v2002_v21, %v1972_v3 }
0x13a1   :  { %2014 = vst.msk [vmem:[#allocation2] sm:$0xff] %vm117_vm4, %v2003_v53 }
0x13a6   :  { %v2005_v22 = vpop.f32.mrf.mxu2 }
0x13a7   :  { %v2006_v34 = vadd.f32 %v2005_v22, %v1972_v3 }
0x13a9   :  { %2015 = vst.msk [vmem:[#allocation2 + $0x8] sm:$0xff] %vm117_vm4, %v2006_v34 }
0x13ae   :  { %v2008_v12 = vpop.f32.mrf.mxu2 }
0x13af   :  { %v2009_v55 = vadd.f32 %v2008_v12, %v1972_v3 }
0x13b1   :  { %2016 = vst.msk [vmem:[#allocation2 + $0x10] sm:$0xff] %vm117_vm4, %v2009_v55 }
0x13b6   :  { %v2011_v2 = vpop.f32.mrf.mxu2 }
0x13b7   :  { %v2012_v16 = vadd.f32 %v2011_v2, %v1972_v3 }
0x13b9   :  { %2017 = vst.msk [vmem:[#allocation2 + $0x18] sm:$0xff] %vm117_vm4, %v2012_v16 }
0x13ba   :  { %2030 = dma.vmem_to_hbm [thread:$0]  %s2023_s7, 512, %s2025_s21, [#allocation3], %s2330_s22, %s2330_s22, %s2331_s23  }
0x13bb   :  { %2322 = dma.done.wait [#allocation3], 512  }
0x13bc   :  { %2323 = vsyncadd [#allocation3], 4294966784 }
0x13bd   :  { %2035 = vsyncpa [#allocation3], 1 }

</bundles_post_ra>
